<compile_context>
chip_gen: v7x
topology: tpu7x:2x2x1
jax: 0.10.0
libtpu: 0.0.40
codegen_flags: <defaults>
</compile_context>

<pallas_src>
import functools
import math

import jax
import jax.numpy as jnp
from jax.experimental import pallas as pl
from jax.experimental.pallas import tpu as pltpu


def _round_up(x, m):
    return (x + m - 1) // m * m


def _convlstm_kernel(x_ref, h_ref, w_ref, c_ref, h_out_ref, c_out_ref, slab_ref, *,
                     kh, kw, H, Wp, cin, hd, x_slot, h_slot, h_start, k_bias,
                     matmul_dtype):
    """Fused ConvLSTM cell for one batch image (channels-major layout).

    x_ref     : (1, cin, L)     zero-padded input, flattened padded spatial,
                                L = Hp*Wp + kw - 1
    h_ref     : (1, hd,  L)     zero-padded h_cur, same layout
    w_ref     : (4*hd, K)       conv taps (+ bias folded in at column k_bias)
    c_ref     : (1, hd, H*Wp)   current cell state on the padded-width grid
    h_out_ref : (1, hd, H*Wp)
    c_out_ref : (1, hd, H*Wp)
    slab_ref  : (K, H*Wp) f32   im2col scratch in VMEM
    """
    HWp = H * Wp

    # ---- im2col slab (built once per image, in VMEM) -------------------------
    # Zero first: the padded/unused K rows have zero weight columns, but they
    # must also be finite in the slab (0 * Inf = NaN).  This is ~HWp*K/1024
    # vector stores, negligible.
    slab_ref[...] = jnp.zeros_like(slab_ref)
    slab_ref[k_bias:k_bias + 1, :] = jnp.ones((1, HWp), jnp.float32)  # bias row

    for t in range(kh * kw):                     # static unroll, kh*kw is small
        dy, dx = t // kw, t % kw
        off = dy * Wp + dx                       # flat shift of this tap
        # contiguous lane slices of the flattened padded images: (C, H*Wp)
        slab_ref[t * x_slot: t * x_slot + cin, :] = x_ref[0, :, off: off + HWp]
        r0 = h_start + t * h_slot
        slab_ref[r0: r0 + hd, :] = h_ref[0, :, off: off + HWp]

    # ---- conv + bias: ONE (4*hd, K) x (K, H*Wp) matmul, f32 accumulation -----
    acc = jnp.dot(w_ref[...],
                  slab_ref[...].astype(matmul_dtype),
                  preferred_element_type=jnp.float32)        # (4*hd, H*Wp)

    # ---- gates: one lane-dense tanh over the whole slab ----------------------
    # rows [0, 3*hd)   : i, f, o  -> sigmoid(x) = 0.5*tanh(0.5*x) + 0.5
    # rows [3*hd, 4*hd): g        -> tanh(x)
    row = jax.lax.broadcasted_iota(jnp.int32, acc.shape, 0)
    is_sig = row < 3 * hd
    t_all = jnp.tanh(jnp.where(is_sig, 0.5 * acc, acc))
    act = jnp.where(is_sig, 0.5 * t_all + 0.5, t_all)

    gate_i = act[0 * hd:1 * hd, :]
    gate_f = act[1 * hd:2 * hd, :]
    gate_o = act[2 * hd:3 * hd, :]
    gate_g = act[3 * hd:4 * hd, :]

    # ---- state update: f32, lane-dense (hd, H*Wp) ----------------------------
    c_cur = c_ref[0].astype(jnp.float32)
    c_next = gate_f * c_cur + gate_i * gate_g
    h_next = gate_o * jnp.tanh(c_next)

    c_out_ref[0] = c_next.astype(c_out_ref.dtype)
    h_out_ref[0] = h_next.astype(h_out_ref.dtype)


def conv_lstm_cell(x_nchw, h_nchw, c_nchw, weight_oihw, bias, kernel_size, *,
                   matmul_dtype=jnp.bfloat16):
    """Equivalent of ConvLSTMCell.forward(x, (h, c)) for NCHW tensors.

    weight_oihw: PyTorch Conv2d weight, shape (4*hidden, input+hidden, kh, kw)
    bias       : (4*hidden,) or None
    matmul_dtype: MXU operand dtype (bf16 is native rate on v5e/v6e/v7x; use
                  jnp.float32 for exact-f32 parity).  Accumulation is f32 either way.
    Returns (h_next, c_next), both NCHW.
    """
    kh, kw = kernel_size
    # 'same' padding below relies on Hp = H + kh - 1 / Wp = W + kw - 1.
    assert kh % 2 == 1 and kw % 2 == 1, "ConvLSTMCell requires odd kernel sizes"
    ph, pw = kh // 2, kw // 2
    B, cin, H, W = x_nchw.shape
    hd = h_nchw.shape[1]
    c_total = cin + hd
    assert weight_oihw.shape == (4 * hd, c_total, kh, kw)
    assert c_nchw.shape == (B, hd, H, W)

    Hp, Wp = H + kh - 1, W + kw - 1
    HWp = H * Wp
    T = kh * kw
    L = Hp * Wp + (kw - 1)        # slack so every tap window of length H*Wp is in-bounds

    # --- K-slab geometry: sublane-aligned slots, bias folded in as last row ---
    x_slot = _round_up(cin, 8)
    h_slot = _round_up(hd, 8)
    h_start = _round_up(T * x_slot, 8)
    k_bias = h_start + T * h_slot
    K = _round_up(k_bias + 1, 128)

    # --- inputs: NCHW -> zero-padded, flattened padded spatial.  Pure pads and
    #     reshapes: NO transposes, NO channel concat (no extra HBM passes). ----
    def flat_pad(a):
        a = jnp.pad(a, ((0, 0), (0, 0), (ph, ph), (pw, pw)))
        a = a.reshape(B, a.shape[1], Hp * Wp)
        return jnp.pad(a, ((0, 0), (0, 0), (0, L - Hp * Wp)))

    x_flat = flat_pad(x_nchw)                                   # (B, cin, L)
    h_flat = flat_pad(h_nchw)                                   # (B, hd,  L)
    # cell state on the padded-width grid (extra columns are sliced off below)
    c_flat = jnp.pad(c_nchw, ((0, 0), (0, 0), (0, 0), (0, Wp - W))).reshape(B, hd, HWp)

    # --- weight: (4hd, c_total, kh, kw) -> transposed K-slab layout ------------
    # cross-correlation: out[o] += padded[c, y+dy, x+dx] * w[o, c, dy, dx]
    w_tap = jnp.transpose(weight_oihw, (2, 3, 1, 0)).reshape(T, c_total, 4 * hd)
    w_x = jnp.pad(w_tap[:, :cin, :], ((0, 0), (0, x_slot - cin), (0, 0)))
    w_x = jnp.transpose(w_x, (2, 0, 1)).reshape(4 * hd, T * x_slot)
    w_h = jnp.pad(w_tap[:, cin:, :], ((0, 0), (0, h_slot - hd), (0, 0)))
    w_h = jnp.transpose(w_h, (2, 0, 1)).reshape(4 * hd, T * h_slot)
    w_mat = jnp.zeros((4 * hd, K), jnp.float32)
    w_mat = w_mat.at[:, :T * x_slot].set(w_x)
    w_mat = w_mat.at[:, h_start:h_start + T * h_slot].set(w_h)
    if bias is not None:
        w_mat = w_mat.at[:, k_bias].set(bias.astype(jnp.float32))
    w_mat = w_mat.astype(matmul_dtype)

    kernel = functools.partial(
        _convlstm_kernel, kh=kh, kw=kw, H=H, Wp=Wp, cin=cin, hd=hd,
        x_slot=x_slot, h_slot=h_slot, h_start=h_start, k_bias=k_bias,
        matmul_dtype=matmul_dtype)

    out_dtype = x_nchw.dtype
    flops = int(2 * B * (4 * hd) * K * HWp)
    transcendentals = int(B * HWp * (4 * hd + hd))
    bytes_accessed = int((x_flat.size + h_flat.size + c_flat.size + 2 * B * hd * HWp) * 4
                         + w_mat.size * w_mat.dtype.itemsize)

    # rough per-step VMEM need (double-buffered blocks + im2col scratch)
    blk_bytes = 4 * (cin * L + hd * L + 3 * hd * HWp) + 2 * 2 * 4 * hd * K
    est_vmem = 2 * blk_bytes + 4 * K * HWp
    vmem_limit = int(min(64 * 2 ** 20, max(32 * 2 ** 20, 2 * est_vmem)))

    h_out, c_out = pl.pallas_call(
        kernel,
        out_shape=(jax.ShapeDtypeStruct((B, hd, HWp), out_dtype),
                   jax.ShapeDtypeStruct((B, hd, HWp), out_dtype)),
        grid_spec=pltpu.PrefetchScalarGridSpec(
            num_scalar_prefetch=0,
            grid=(B,),
            in_specs=[
                pl.BlockSpec((1, cin, L), lambda b: (b, 0, 0)),
                pl.BlockSpec((1, hd, L), lambda b: (b, 0, 0)),
                # weight (+folded bias) is grid-invariant; TODO(synk): could use
                # pipeline_mode=pl.Buffered(1) to drop its second buffer.
                pl.BlockSpec((4 * hd, K), lambda b: (0, 0)),
                pl.BlockSpec((1, hd, HWp), lambda b: (b, 0, 0)),
            ],
            out_specs=[
                pl.BlockSpec((1, hd, HWp), lambda b: (b, 0, 0)),
                pl.BlockSpec((1, hd, HWp), lambda b: (b, 0, 0)),
            ],
            scratch_shapes=[pltpu.VMEM((K, HWp), jnp.float32)],
        ),
        compiler_params=pltpu.CompilerParams(
            dimension_semantics=("parallel",),      # batch images are independent
            vmem_limit_bytes=vmem_limit,
        ),
        cost_estimate=pl.CostEstimate(
            flops=flops, transcendentals=transcendentals,
            bytes_accessed=bytes_accessed),
    )(x_flat, h_flat, w_mat, c_flat)

    # padded-width grid -> NCHW (cheap slice).
    h_next = h_out.reshape(B, hd, H, Wp)[..., :W]
    c_next = c_out.reshape(B, hd, H, Wp)[..., :W]
    return h_next, c_next


def _reference(x, h, c, weight, bias):
    """Pure-JAX f32 reference mirroring the PyTorch module."""
    hd = h.shape[1]
    combined = jnp.concatenate([x, h], axis=1)
    out = jax.lax.conv_general_dilated(
        combined, weight, window_strides=(1, 1), padding="SAME",
        dimension_numbers=("NCHW", "OIHW", "NCHW"))
    if bias is not None:
        out = out + bias[None, :, None, None]
    cc_i = out[:, 0 * hd:1 * hd]
    cc_f = out[:, 1 * hd:2 * hd]
    cc_o = out[:, 2 * hd:3 * hd]
    cc_g = out[:, 3 * hd:4 * hd]
    i = jax.nn.sigmoid(cc_i)
    f = jax.nn.sigmoid(cc_f)
    o = jax.nn.sigmoid(cc_o)
    g = jnp.tanh(cc_g)
    c_next = f * c + i * g
    h_next = o * jnp.tanh(c_next)
    return h_next, c_next


if __name__ == "__main__":
    key = jax.random.PRNGKey(0)
    k1, k2, k3, k4, k5 = jax.random.split(key, 5)

    # Small shapes consistent with the module: batch=2, input_dim=4,
    # hidden_dim=32, 16x16 spatial, 3x3 kernel, bias=True.
    B, cin, hd, H, W = 2, 4, 32, 16, 16
    kh, kw = 3, 3

    x = jax.random.normal(k1, (B, cin, H, W), jnp.float32)
    h0 = jax.random.normal(k2, (B, hd, H, W), jnp.float32)
    c0 = jax.random.normal(k3, (B, hd, H, W), jnp.float32)

    fan_in = (cin + hd) * kh * kw
    weight = jax.random.normal(k4, (4 * hd, cin + hd, kh, kw), jnp.float32) / math.sqrt(fan_in)
    bias = jax.random.normal(k5, (4 * hd,), jnp.float32) * 0.1

    fwd = jax.jit(functools.partial(conv_lstm_cell, kernel_size=(kh, kw)))
    h_next, c_next = fwd(x, h0, c0, weight, bias)
    h_next = jax.block_until_ready(h_next)
    c_next = jax.block_until_ready(c_next)

    h_ref, c_ref = _reference(x, h0, c0, weight, bias)

    # bf16 matmul operands with f32 accumulation -> ~1e-2 worst-case abs error.
    tol = dict(atol=2e-2, rtol=2e-2)
    ok = (
        h_next.shape == h_ref.shape
        and c_next.shape == c_ref.shape
        and bool(jnp.allclose(h_next, h_ref, **tol))
        and bool(jnp.allclose(c_next, c_ref, **tol))
    )

    if ok:
        print("KERNEL_OK")
    else:
        print("MISMATCH: max|dh|=%e max|dc|=%e" % (
            float(jnp.max(jnp.abs(h_next - h_ref))),
            float(jnp.max(jnp.abs(c_next - c_ref)))))
</pallas_src>

<mosaic_0001>
module attributes {stable_mosaic.version = 11 : i64} {
  func.func @_convlstm_kernel(%arg0: i32, %arg1: memref<1x4x326xf32, #tpu.memory_space<vmem>>, %arg2: memref<1x32x326xf32, #tpu.memory_space<vmem>>, %arg3: memref<128x384xbf16, #tpu.memory_space<vmem>>, %arg4: memref<1x32x288xf32, #tpu.memory_space<vmem>>, %arg5: memref<1x32x288xf32, #tpu.memory_space<vmem>>, %arg6: memref<1x32x288xf32, #tpu.memory_space<vmem>>, %arg7: memref<384x288xf32, #tpu.memory_space<vmem>>) attributes {dimension_semantics = [#tpu.dimension_semantics<parallel>], iteration_bounds = array<i64: 2>, scalar_prefetch = 0 : i64, scratch_operands = 1 : i64, tpu.core_type = #tpu.core_type<tc>, window_params = [{transform_indices = @transform_0, window_bounds = array<i64: 1, 4, 326>}, {transform_indices = @transform_1, window_bounds = array<i64: 1, 32, 326>}, {pipeline_mode = #tpu.pipeline_mode<synchronous>, transform_indices = @transform_2, window_bounds = array<i64: 128, 384>}, {transform_indices = @transform_3, window_bounds = array<i64: 1, 32, 288>}, {transform_indices = @transform_4, window_bounds = array<i64: 1, 32, 288>}, {transform_indices = @transform_5, window_bounds = array<i64: 1, 32, 288>}]} {
    %cst = arith.constant 0.000000e+00 : f32
    %0 = vector.broadcast %cst : f32 to vector<384x288xf32>
    %c0 = arith.constant 0 : index
    %c0_0 = arith.constant 0 : index
    %1 = vector.load %arg7[%c0, %c0_0] : memref<384x288xf32, #tpu.memory_space<vmem>>, vector<384x288xf32>
    tpu.vector_store %arg7[%c0, %c0_0], %0 {strides = array<i32>} : memref<384x288xf32, #tpu.memory_space<vmem>>, vector<384x288xf32>,
    %cst_1 = arith.constant 1.000000e+00 : f32
    %2 = vector.broadcast %cst_1 : f32 to vector<1x288xf32>
    %c360 = arith.constant 360 : index
    %c0_2 = arith.constant 0 : index
    %3 = vector.load %arg7[%c360, %c0_2] : memref<384x288xf32, #tpu.memory_space<vmem>>, vector<1x288xf32>
    tpu.vector_store %arg7[%c360, %c0_2], %2 {strides = array<i32>} : memref<384x288xf32, #tpu.memory_space<vmem>>, vector<1x288xf32>,
    %c0_3 = arith.constant 0 : index
    %c0_4 = arith.constant 0 : index
    %c0_5 = arith.constant 0 : index
    %4 = vector.load %arg1[%c0_3, %c0_4, %c0_5] : memref<1x4x326xf32, #tpu.memory_space<vmem>>, vector<1x4x288xf32>
    %5 = vector.shape_cast %4 : vector<1x4x288xf32> to vector<4x288xf32>
    %c0_6 = arith.constant 0 : index
    %c0_7 = arith.constant 0 : index
    %6 = vector.load %arg7[%c0_6, %c0_7] : memref<384x288xf32, #tpu.memory_space<vmem>>, vector<4x288xf32>
    tpu.vector_store %arg7[%c0_6, %c0_7], %5 {strides = array<i32>} : memref<384x288xf32, #tpu.memory_space<vmem>>, vector<4x288xf32>,
    %c0_8 = arith.constant 0 : index
    %c0_9 = arith.constant 0 : index
    %c0_10 = arith.constant 0 : index
    %7 = vector.load %arg2[%c0_8, %c0_9, %c0_10] : memref<1x32x326xf32, #tpu.memory_space<vmem>>, vector<1x32x288xf32>
    %8 = vector.shape_cast %7 : vector<1x32x288xf32> to vector<32x288xf32>
    %c72 = arith.constant 72 : index
    %c0_11 = arith.constant 0 : index
    %9 = vector.load %arg7[%c72, %c0_11] : memref<384x288xf32, #tpu.memory_space<vmem>>, vector<32x288xf32>
    tpu.vector_store %arg7[%c72, %c0_11], %8 {strides = array<i32>} : memref<384x288xf32, #tpu.memory_space<vmem>>, vector<32x288xf32>,
    %c0_12 = arith.constant 0 : index
    %c0_13 = arith.constant 0 : index
    %c1 = arith.constant 1 : index
    %10 = vector.load %arg1[%c0_12, %c0_13, %c1] : memref<1x4x326xf32, #tpu.memory_space<vmem>>, vector<1x4x288xf32>
    %11 = vector.shape_cast %10 : vector<1x4x288xf32> to vector<4x288xf32>
    %c8 = arith.constant 8 : index
    %c0_14 = arith.constant 0 : index
    %12 = vector.load %arg7[%c8, %c0_14] : memref<384x288xf32, #tpu.memory_space<vmem>>, vector<4x288xf32>
    tpu.vector_store %arg7[%c8, %c0_14], %11 {strides = array<i32>} : memref<384x288xf32, #tpu.memory_space<vmem>>, vector<4x288xf32>,
    %c0_15 = arith.constant 0 : index
    %c0_16 = arith.constant 0 : index
    %c1_17 = arith.constant 1 : index
    %13 = vector.load %arg2[%c0_15, %c0_16, %c1_17] : memref<1x32x326xf32, #tpu.memory_space<vmem>>, vector<1x32x288xf32>
    %14 = vector.shape_cast %13 : vector<1x32x288xf32> to vector<32x288xf32>
    %c104 = arith.constant 104 : index
    %c0_18 = arith.constant 0 : index
    %15 = vector.load %arg7[%c104, %c0_18] : memref<384x288xf32, #tpu.memory_space<vmem>>, vector<32x288xf32>
    tpu.vector_store %arg7[%c104, %c0_18], %14 {strides = array<i32>} : memref<384x288xf32, #tpu.memory_space<vmem>>, vector<32x288xf32>,
    %c0_19 = arith.constant 0 : index
    %c0_20 = arith.constant 0 : index
    %c2 = arith.constant 2 : index
    %16 = vector.load %arg1[%c0_19, %c0_20, %c2] : memref<1x4x326xf32, #tpu.memory_space<vmem>>, vector<1x4x288xf32>
    %17 = vector.shape_cast %16 : vector<1x4x288xf32> to vector<4x288xf32>
    %c16 = arith.constant 16 : index
    %c0_21 = arith.constant 0 : index
    %18 = vector.load %arg7[%c16, %c0_21] : memref<384x288xf32, #tpu.memory_space<vmem>>, vector<4x288xf32>
    tpu.vector_store %arg7[%c16, %c0_21], %17 {strides = array<i32>} : memref<384x288xf32, #tpu.memory_space<vmem>>, vector<4x288xf32>,
    %c0_22 = arith.constant 0 : index
    %c0_23 = arith.constant 0 : index
    %c2_24 = arith.constant 2 : index
    %19 = vector.load %arg2[%c0_22, %c0_23, %c2_24] : memref<1x32x326xf32, #tpu.memory_space<vmem>>, vector<1x32x288xf32>
    %20 = vector.shape_cast %19 : vector<1x32x288xf32> to vector<32x288xf32>
    %c136 = arith.constant 136 : index
    %c0_25 = arith.constant 0 : index
    %21 = vector.load %arg7[%c136, %c0_25] : memref<384x288xf32, #tpu.memory_space<vmem>>, vector<32x288xf32>
    tpu.vector_store %arg7[%c136, %c0_25], %20 {strides = array<i32>} : memref<384x288xf32, #tpu.memory_space<vmem>>, vector<32x288xf32>,
    %c0_26 = arith.constant 0 : index
    %c0_27 = arith.constant 0 : index
    %c18 = arith.constant 18 : index
    %22 = vector.load %arg1[%c0_26, %c0_27, %c18] : memref<1x4x326xf32, #tpu.memory_space<vmem>>, vector<1x4x288xf32>
    %23 = vector.shape_cast %22 : vector<1x4x288xf32> to vector<4x288xf32>
    %c24 = arith.constant 24 : index
    %c0_28 = arith.constant 0 : index
    %24 = vector.load %arg7[%c24, %c0_28] : memref<384x288xf32, #tpu.memory_space<vmem>>, vector<4x288xf32>
    tpu.vector_store %arg7[%c24, %c0_28], %23 {strides = array<i32>} : memref<384x288xf32, #tpu.memory_space<vmem>>, vector<4x288xf32>,
    %c0_29 = arith.constant 0 : index
    %c0_30 = arith.constant 0 : index
    %c18_31 = arith.constant 18 : index
    %25 = vector.load %arg2[%c0_29, %c0_30, %c18_31] : memref<1x32x326xf32, #tpu.memory_space<vmem>>, vector<1x32x288xf32>
    %26 = vector.shape_cast %25 : vector<1x32x288xf32> to vector<32x288xf32>
    %c168 = arith.constant 168 : index
    %c0_32 = arith.constant 0 : index
    %27 = vector.load %arg7[%c168, %c0_32] : memref<384x288xf32, #tpu.memory_space<vmem>>, vector<32x288xf32>
    tpu.vector_store %arg7[%c168, %c0_32], %26 {strides = array<i32>} : memref<384x288xf32, #tpu.memory_space<vmem>>, vector<32x288xf32>,
    %c0_33 = arith.constant 0 : index
    %c0_34 = arith.constant 0 : index
    %c19 = arith.constant 19 : index
    %28 = vector.load %arg1[%c0_33, %c0_34, %c19] : memref<1x4x326xf32, #tpu.memory_space<vmem>>, vector<1x4x288xf32>
    %29 = vector.shape_cast %28 : vector<1x4x288xf32> to vector<4x288xf32>
    %c32 = arith.constant 32 : index
    %c0_35 = arith.constant 0 : index
    %30 = vector.load %arg7[%c32, %c0_35] : memref<384x288xf32, #tpu.memory_space<vmem>>, vector<4x288xf32>
    tpu.vector_store %arg7[%c32, %c0_35], %29 {strides = array<i32>} : memref<384x288xf32, #tpu.memory_space<vmem>>, vector<4x288xf32>,
    %c0_36 = arith.constant 0 : index
    %c0_37 = arith.constant 0 : index
    %c19_38 = arith.constant 19 : index
    %31 = vector.load %arg2[%c0_36, %c0_37, %c19_38] : memref<1x32x326xf32, #tpu.memory_space<vmem>>, vector<1x32x288xf32>
    %32 = vector.shape_cast %31 : vector<1x32x288xf32> to vector<32x288xf32>
    %c200 = arith.constant 200 : index
    %c0_39 = arith.constant 0 : index
    %33 = vector.load %arg7[%c200, %c0_39] : memref<384x288xf32, #tpu.memory_space<vmem>>, vector<32x288xf32>
    tpu.vector_store %arg7[%c200, %c0_39], %32 {strides = array<i32>} : memref<384x288xf32, #tpu.memory_space<vmem>>, vector<32x288xf32>,
    %c0_40 = arith.constant 0 : index
    %c0_41 = arith.constant 0 : index
    %c20 = arith.constant 20 : index
    %34 = vector.load %arg1[%c0_40, %c0_41, %c20] : memref<1x4x326xf32, #tpu.memory_space<vmem>>, vector<1x4x288xf32>
    %35 = vector.shape_cast %34 : vector<1x4x288xf32> to vector<4x288xf32>
    %c40 = arith.constant 40 : index
    %c0_42 = arith.constant 0 : index
    %36 = vector.load %arg7[%c40, %c0_42] : memref<384x288xf32, #tpu.memory_space<vmem>>, vector<4x288xf32>
    tpu.vector_store %arg7[%c40, %c0_42], %35 {strides = array<i32>} : memref<384x288xf32, #tpu.memory_space<vmem>>, vector<4x288xf32>,
    %c0_43 = arith.constant 0 : index
    %c0_44 = arith.constant 0 : index
    %c20_45 = arith.constant 20 : index
    %37 = vector.load %arg2[%c0_43, %c0_44, %c20_45] : memref<1x32x326xf32, #tpu.memory_space<vmem>>, vector<1x32x288xf32>
    %38 = vector.shape_cast %37 : vector<1x32x288xf32> to vector<32x288xf32>
    %c232 = arith.constant 232 : index
    %c0_46 = arith.constant 0 : index
    %39 = vector.load %arg7[%c232, %c0_46] : memref<384x288xf32, #tpu.memory_space<vmem>>, vector<32x288xf32>
    tpu.vector_store %arg7[%c232, %c0_46], %38 {strides = array<i32>} : memref<384x288xf32, #tpu.memory_space<vmem>>, vector<32x288xf32>,
    %c0_47 = arith.constant 0 : index
    %c0_48 = arith.constant 0 : index
    %c36 = arith.constant 36 : index
    %40 = vector.load %arg1[%c0_47, %c0_48, %c36] : memref<1x4x326xf32, #tpu.memory_space<vmem>>, vector<1x4x288xf32>
    %41 = vector.shape_cast %40 : vector<1x4x288xf32> to vector<4x288xf32>
    %c48 = arith.constant 48 : index
    %c0_49 = arith.constant 0 : index
    %42 = vector.load %arg7[%c48, %c0_49] : memref<384x288xf32, #tpu.memory_space<vmem>>, vector<4x288xf32>
    tpu.vector_store %arg7[%c48, %c0_49], %41 {strides = array<i32>} : memref<384x288xf32, #tpu.memory_space<vmem>>, vector<4x288xf32>,
    %c0_50 = arith.constant 0 : index
    %c0_51 = arith.constant 0 : index
    %c36_52 = arith.constant 36 : index
    %43 = vector.load %arg2[%c0_50, %c0_51, %c36_52] : memref<1x32x326xf32, #tpu.memory_space<vmem>>, vector<1x32x288xf32>
    %44 = vector.shape_cast %43 : vector<1x32x288xf32> to vector<32x288xf32>
    %c264 = arith.constant 264 : index
    %c0_53 = arith.constant 0 : index
    %45 = vector.load %arg7[%c264, %c0_53] : memref<384x288xf32, #tpu.memory_space<vmem>>, vector<32x288xf32>
    tpu.vector_store %arg7[%c264, %c0_53], %44 {strides = array<i32>} : memref<384x288xf32, #tpu.memory_space<vmem>>, vector<32x288xf32>,
    %c0_54 = arith.constant 0 : index
    %c0_55 = arith.constant 0 : index
    %c37 = arith.constant 37 : index
    %46 = vector.load %arg1[%c0_54, %c0_55, %c37] : memref<1x4x326xf32, #tpu.memory_space<vmem>>, vector<1x4x288xf32>
    %47 = vector.shape_cast %46 : vector<1x4x288xf32> to vector<4x288xf32>
    %c56 = arith.constant 56 : index
    %c0_56 = arith.constant 0 : index
    %48 = vector.load %arg7[%c56, %c0_56] : memref<384x288xf32, #tpu.memory_space<vmem>>, vector<4x288xf32>
    tpu.vector_store %arg7[%c56, %c0_56], %47 {strides = array<i32>} : memref<384x288xf32, #tpu.memory_space<vmem>>, vector<4x288xf32>,
    %c0_57 = arith.constant 0 : index
    %c0_58 = arith.constant 0 : index
    %c37_59 = arith.constant 37 : index
    %49 = vector.load %arg2[%c0_57, %c0_58, %c37_59] : memref<1x32x326xf32, #tpu.memory_space<vmem>>, vector<1x32x288xf32>
    %50 = vector.shape_cast %49 : vector<1x32x288xf32> to vector<32x288xf32>
    %c296 = arith.constant 296 : index
    %c0_60 = arith.constant 0 : index
    %51 = vector.load %arg7[%c296, %c0_60] : memref<384x288xf32, #tpu.memory_space<vmem>>, vector<32x288xf32>
    tpu.vector_store %arg7[%c296, %c0_60], %50 {strides = array<i32>} : memref<384x288xf32, #tpu.memory_space<vmem>>, vector<32x288xf32>,
    %c0_61 = arith.constant 0 : index
    %c0_62 = arith.constant 0 : index
    %c38 = arith.constant 38 : index
    %52 = vector.load %arg1[%c0_61, %c0_62, %c38] : memref<1x4x326xf32, #tpu.memory_space<vmem>>, vector<1x4x288xf32>
    %53 = vector.shape_cast %52 : vector<1x4x288xf32> to vector<4x288xf32>
    %c64 = arith.constant 64 : index
    %c0_63 = arith.constant 0 : index
    %54 = vector.load %arg7[%c64, %c0_63] : memref<384x288xf32, #tpu.memory_space<vmem>>, vector<4x288xf32>
    tpu.vector_store %arg7[%c64, %c0_63], %53 {strides = array<i32>} : memref<384x288xf32, #tpu.memory_space<vmem>>, vector<4x288xf32>,
    %c0_64 = arith.constant 0 : index
    %c0_65 = arith.constant 0 : index
    %c38_66 = arith.constant 38 : index
    %55 = vector.load %arg2[%c0_64, %c0_65, %c38_66] : memref<1x32x326xf32, #tpu.memory_space<vmem>>, vector<1x32x288xf32>
    %56 = vector.shape_cast %55 : vector<1x32x288xf32> to vector<32x288xf32>
    %c328 = arith.constant 328 : index
    %c0_67 = arith.constant 0 : index
    %57 = vector.load %arg7[%c328, %c0_67] : memref<384x288xf32, #tpu.memory_space<vmem>>, vector<32x288xf32>
    tpu.vector_store %arg7[%c328, %c0_67], %56 {strides = array<i32>} : memref<384x288xf32, #tpu.memory_space<vmem>>, vector<32x288xf32>,
    %c0_68 = arith.constant 0 : index
    %c0_69 = arith.constant 0 : index
    %58 = vector.load %arg3[%c0_68, %c0_69] : memref<128x384xbf16, #tpu.memory_space<vmem>>, vector<128x384xbf16>
    %c0_70 = arith.constant 0 : index
    %c0_71 = arith.constant 0 : index
    %59 = vector.load %arg7[%c0_70, %c0_71] : memref<384x288xf32, #tpu.memory_space<vmem>>, vector<384x288xf32>
    %60 = arith.truncf %59 : vector<384x288xf32> to vector<384x288xbf16>
    %cst_72 = arith.constant dense<0.000000e+00> : vector<128x288xf32>
    %61 = tpu.matmul %58, %60, %cst_72 {dimension_numbers = #tpu.dot_dimension_numbers<[1], [0], [0], [1], [0, 0, 1, 1], [], []>} : vector<128x384xbf16>, vector<384x288xbf16>, vector<128x288xf32> -> vector<128x288xf32>
    %62 = tpu.iota {dimensions = array<i32: 0>} : vector<128x288xi32>
    %c96_i32 = arith.constant 96 : i32
    %63 = vector.broadcast %c96_i32 : i32 to vector<128x288xi32>
    %64 = arith.cmpi slt, %62, %63 : vector<128x288xi32>
    %cst_73 = arith.constant 5.000000e-01 : f32
    %65 = vector.broadcast %cst_73 : f32 to vector<128x288xf32>
    %66 = arith.mulf %65, %61 : vector<128x288xf32>
    %67 = arith.select %64, %66, %61 : vector<128x288xi1>, vector<128x288xf32>
    %68 = math.tanh %67 : vector<128x288xf32>
    %cst_74 = arith.constant 5.000000e-01 : f32
    %69 = vector.broadcast %cst_74 : f32 to vector<128x288xf32>
    %70 = arith.mulf %69, %68 : vector<128x288xf32>
    %cst_75 = arith.constant 5.000000e-01 : f32
    %71 = vector.broadcast %cst_75 : f32 to vector<128x288xf32>
    %72 = arith.addf %70, %71 : vector<128x288xf32>
    %73 = arith.select %64, %72, %68 : vector<128x288xi1>, vector<128x288xf32>
    %74 = vector.extract_strided_slice %73 {offsets = [0, 0], sizes = [32, 288], strides = [1, 1]} : vector<128x288xf32> to vector<32x288xf32>
    %75 = vector.extract_strided_slice %73 {offsets = [32, 0], sizes = [32, 288], strides = [1, 1]} : vector<128x288xf32> to vector<32x288xf32>
    %76 = vector.extract_strided_slice %73 {offsets = [64, 0], sizes = [32, 288], strides = [1, 1]} : vector<128x288xf32> to vector<32x288xf32>
    %77 = vector.extract_strided_slice %73 {offsets = [96, 0], sizes = [32, 288], strides = [1, 1]} : vector<128x288xf32> to vector<32x288xf32>
    %c0_76 = arith.constant 0 : index
    %c0_77 = arith.constant 0 : index
    %c0_78 = arith.constant 0 : index
    %78 = vector.load %arg4[%c0_76, %c0_77, %c0_78] : memref<1x32x288xf32, #tpu.memory_space<vmem>>, vector<1x32x288xf32>
    %79 = vector.shape_cast %78 : vector<1x32x288xf32> to vector<32x288xf32>
    %80 = arith.mulf %75, %79 : vector<32x288xf32>
    %81 = arith.mulf %74, %77 : vector<32x288xf32>
    %82 = arith.addf %80, %81 : vector<32x288xf32>
    %83 = math.tanh %82 : vector<32x288xf32>
    %84 = arith.mulf %76, %83 : vector<32x288xf32>
    %c0_79 = arith.constant 0 : index
    %c0_80 = arith.constant 0 : index
    %c0_81 = arith.constant 0 : index
    %85 = vector.load %arg6[%c0_79, %c0_80, %c0_81] : memref<1x32x288xf32, #tpu.memory_space<vmem>>, vector<1x32x288xf32>
    %86 = vector.shape_cast %85 : vector<1x32x288xf32> to vector<32x288xf32>
    %87 = vector.shape_cast %82 : vector<32x288xf32> to vector<1x32x288xf32>
    tpu.vector_store %arg6[%c0_79, %c0_80, %c0_81], %87 {strides = array<i32>} : memref<1x32x288xf32, #tpu.memory_space<vmem>>, vector<1x32x288xf32>,
    %c0_82 = arith.constant 0 : index
    %c0_83 = arith.constant 0 : index
    %c0_84 = arith.constant 0 : index
    %88 = vector.load %arg5[%c0_82, %c0_83, %c0_84] : memref<1x32x288xf32, #tpu.memory_space<vmem>>, vector<1x32x288xf32>
    %89 = vector.shape_cast %88 : vector<1x32x288xf32> to vector<32x288xf32>
    %90 = vector.shape_cast %84 : vector<32x288xf32> to vector<1x32x288xf32>
    tpu.vector_store %arg5[%c0_82, %c0_83, %c0_84], %90 {strides = array<i32>} : memref<1x32x288xf32, #tpu.memory_space<vmem>>, vector<1x32x288xf32>,
    return
  }
  func.func @transform_0(%arg0: i32) -> (i32, i32, i32) {
    %c0_i32 = arith.constant 0 : i32
    %c0_i32_0 = arith.constant 0 : i32
    %c0_i32_1 = arith.constant 0 : i32
    return %arg0, %c0_i32, %c0_i32_0 : i32, i32, i32
  }
  func.func @transform_1(%arg0: i32) -> (i32, i32, i32) {
    %c0_i32 = arith.constant 0 : i32
    %c0_i32_0 = arith.constant 0 : i32
    %c0_i32_1 = arith.constant 0 : i32
    return %arg0, %c0_i32, %c0_i32_0 : i32, i32, i32
  }
  func.func @transform_2(%arg0: i32) -> (i32, i32) {
    %c0_i32 = arith.constant 0 : i32
    %c0_i32_0 = arith.constant 0 : i32
    %c0_i32_1 = arith.constant 0 : i32
    return %c0_i32, %c0_i32_0 : i32, i32
  }
  func.func @transform_3(%arg0: i32) -> (i32, i32, i32) {
    %c0_i32 = arith.constant 0 : i32
    %c0_i32_0 = arith.constant 0 : i32
    %c0_i32_1 = arith.constant 0 : i32
    return %arg0, %c0_i32, %c0_i32_0 : i32, i32, i32
  }
  func.func @transform_4(%arg0: i32) -> (i32, i32, i32) {
    %c0_i32 = arith.constant 0 : i32
    %c0_i32_0 = arith.constant 0 : i32
    %c0_i32_1 = arith.constant 0 : i32
    return %arg0, %c0_i32, %c0_i32_0 : i32, i32, i32
  }
  func.func @transform_5(%arg0: i32) -> (i32, i32, i32) {
    %c0_i32 = arith.constant 0 : i32
    %c0_i32_0 = arith.constant 0 : i32
    %c0_i32_1 = arith.constant 0 : i32
    return %arg0, %c0_i32, %c0_i32_0 : i32, i32, i32
  }
}

</mosaic_0001>

<bundles_post_ra>
// kernel: conv_lstm_cell.1
= control target key start
LH: loop header
LB: loop body
LE: loop exit
PB: predicated region body
PF: predicated region fallthrough
CT: control target
= control target key end

     0   :  { %s3009_s18 = smov 0   ;;  %s3972_s0 = inlined_call_operand.vmem [shape: f32[2,4,326], index: 0, kind: input, shape index: {}]   ;;  %s3973_s1 = inlined_call_operand.vmem [shape: f32[2,32,326], index: 1, kind: input, shape index: {}]   ;;  %s3974_s2 = inlined_call_operand.vmem [shape: bf16[128,384], index: 2, kind: input, shape index: {}]   ;;  %s3975_s3 = inlined_call_operand.vmem [shape: f32[2,32,288], index: 3, kind: input, shape index: {}]   ;;  %s3976_s4 = inlined_call_operand.vmem [shape: f32[2,32,288], index: 4, kind: output, shape index: {0}]   ;;  %s3977_s5 = inlined_call_operand.vmem [shape: f32[2,32,288], index: 5, kind: output, shape index: {1}]  }
   0x1 LB: > { %s2589_s19 = sadd.s32 4294967295, %s2965_s18   ;;  %p2593_p0 = scmp.ge.s32.totalorder %s2965_s18, 1  ;;  %s2965_s18 = sphi %s3009_s18, %s16_s18  }
   0x2   : > { %p210_p1 = scmp.lt.s32.totalorder %s2965_s18, 3 }
   0x4   : > { %p211_p2 = pnand %p2593_p0, %p210_p1 }
   0x5   : > { %p3019_p3 = scmp.lt.s32.totalorder (!%p211_p2), %s2589_s19, 1  ;;  %vm281_vm0 = vcmask (!%p211_p2), 261120   ;;  %v2967_v0 = vmov (!%p211_p2), 0.0   ;;  %s2968_s26 = smov (!%p211_p2), 127   ;;  %vm438_vm1 = vcmask (!%p211_p2), 257024   ;;  %v424_v36 = vlaneseq (!%p211_p2) }
   0x6   : > { %214 = sbr.rel (%p211_p2) target bundleno = 725 (0x2d5), region = 36  ;;  %285 = vst.msk [vmem:[#allocation2 + $0x28] sm:$0xff] (!%p211_p2), %vm281_vm0, %v2967_v0  ;;  %279 = vst [vmem:[#allocation2] sm:$0xff] (!%p211_p2), %v2967_v0  ;;  %s2969_s30 = smov (!%p211_p2), 126   ;;  %vm575_vm3 = vcmask (!%p211_p2), 1031168   ;;  %v2976_v39 = vmov (!%p211_p2), 1.0  }
   0x7   : > { %280 = vst [vmem:[#allocation2 + $0x8] sm:$0xff] (!%p211_p2), %v2967_v0  ;;  %282 = vst.msk [vmem:[#allocation2 + $0x10] sm:$0xff] (!%p211_p2), %vm281_vm0, %v2967_v0  ;;  %s2970_s6 = smov (!%p211_p2), 110   ;;  %s2971_s7 = smov (!%p211_p2), 108   ;;  %vm426_vm2 = vcmp.lt.s32.totalorder (!%p211_p2), %v424_v36, 288  ;;  %vm475_vm4 = vcmask (!%p211_p2), 1039360  }
   0x8   : > { %283 = vst [vmem:[#allocation2 + $0x18] sm:$0xff] (!%p211_p2), %v2967_v0  ;;  %284 = vst [vmem:[#allocation2 + $0x20] sm:$0xff] (!%p211_p2), %v2967_v0  ;;  %s2972_s8 = smov (!%p211_p2), 92   ;;  %s2973_s9 = smov (!%p211_p2), 109   ;;  %vm675_vm5 = vcmask (!%p211_p2), 900096   ;;  %vm875_vm6 = vcmask (!%p211_p2), 883712  }
   0x9   : > { %286 = vst [vmem:[#allocation2 + $0x30] sm:$0xff] (!%p211_p2), %v2967_v0  ;;  %287 = vst [vmem:[#allocation2 + $0x38] sm:$0xff] (!%p211_p2), %v2967_v0  ;;  %s2974_s10 = smov (!%p211_p2), 91   ;;  %s2975_s11 = smov (!%p211_p2), 90   ;;  %vm975_vm7 = vcmask (!%p211_p2), 752640   ;;  %vm775_vm8 = vcmask (!%p211_p2), 891904  }
   0xa   : > { %288 = vst.msk [vmem:[#allocation2 + $0x40] sm:$0xff] (!%p211_p2), %vm281_vm0, %v2967_v0  ;;  %289 = vst [vmem:[#allocation2 + $0x48] sm:$0xff] (!%p211_p2), %v2967_v0  ;;  %vm1075_vm9 = vcmask (!%p211_p2), 744448   ;;  %vm1175_vm10 = vcmask (!%p211_p2), 736256  }
   0xb   : > { %290 = vst [vmem:[#allocation2 + $0x50] sm:$0xff] (!%p211_p2), %v2967_v0  ;;  %291 = vst.msk [vmem:[#allocation2 + $0x58] sm:$0xff] (!%p211_p2), %vm281_vm0, %v2967_v0 }
   0xc   : > { %292 = vst [vmem:[#allocation2 + $0x60] sm:$0xff] (!%p211_p2), %v2967_v0  ;;  %293 = vst [vmem:[#allocation2 + $0x68] sm:$0xff] (!%p211_p2), %v2967_v0 }
   0xd   : > { %294 = vst.msk [vmem:[#allocation2 + $0x70] sm:$0xff] %vm281_vm0, %v2967_v0  ;;  %295 = vst [vmem:[#allocation2 + $0x78] sm:$0xff] %v2967_v0  ;;  %s3980_s19 = smov (!%p3019_p3, %s2589_s19), 1 }
   0xe   : > { %296 = vst [vmem:[#allocation2 + $0x80] sm:$0xff] %v2967_v0  ;;  %297 = vst.msk [vmem:[#allocation2 + $0x88] sm:$0xff] %vm281_vm0, %v2967_v0  ;;  %s2785_s21 = smul.u32 12, %s3980_s19 }
   0xf   : > { %298 = vst [vmem:[#allocation2 + $0x90] sm:$0xff] %v2967_v0  ;;  %299 = vst [vmem:[#allocation2 + $0x98] sm:$0xff] %v2967_v0  ;;  %s3152_s25 = smul.u32 96, %s3980_s19 }
  0x10   : > { %300 = vst.msk [vmem:[#allocation2 + $0xa0] sm:$0xff] %vm281_vm0, %v2967_v0  ;;  %301 = vst [vmem:[#allocation2 + $0xa8] sm:$0xff] %v2967_v0  ;;  %s3146_s24 = scalar_lea.vmem %s3972_s0, %s2785_s21 }
  0x11   : > { %302 = vst [vmem:[#allocation2 + $0xb0] sm:$0xff] %v2967_v0  ;;  %303 = vst.msk [vmem:[#allocation2 + $0xb8] sm:$0xff] %vm281_vm0, %v2967_v0  ;;  %v465_v1 = vld [vmem:[%s3146_s24 + $0x8] sm:$0xf]  ;;  %v3150_v2 = vld [vmem:[%s3146_s24] sm:$0xff]  ;;  %s3168_s29 = scalar_lea.vmem %s3973_s1, %s3152_s25  ;;  %s3877_s16 = scalar_lea.vmem %s3975_s3, %s3152_s25 }
  0x12   : > { %304 = vst [vmem:[#allocation2 + $0xc0] sm:$0xff] %v2967_v0  ;;  %305 = vst [vmem:[#allocation2 + $0xc8] sm:$0xff] %v2967_v0  ;;  %473 = vrot.lane.b32.xlu0 %v465_v1, %s2968_s26  ;;  %469 = vrot.lane.b32.xlu1 %v3150_v2, %s2968_s26  ;;  %v3159_v3 = vcombine.high %v3150_v2, %v3150_v2  ;;  %v565_v4 = vld [vmem:[%s3146_s24 + $0x8] sm:$0xf]  ;;  %v3174_v5 = vld [vmem:[%s3168_s29 + $0x50] sm:$0xff]  ;;  %s3898_s20 = scalar_lea.vmem %s3977_s5, %s3152_s25  ;;  %s3927_s23 = scalar_lea.vmem %s3976_s4, %s3152_s25 }
  0x13   : > { %306 = vst.msk [vmem:[#allocation2 + $0xd0] sm:$0xff] %vm281_vm0, %v2967_v0  ;;  %309 = vst.msk [vmem:[#allocation2 + $0xe8] sm:$0xff] %vm281_vm0, %v2967_v0  ;;  %v432_v6 = vld [vmem:[%s3146_s24 + $0x8] sm:$0xf]  ;;  %v3187_v9 = vld [vmem:[%s3168_s29 + $0x58] sm:$0xff] }
  0x14   : > { %312 = vst.msk [vmem:[#allocation2 + $0x100] sm:$0xff] %vm281_vm0, %v2967_v0  ;;  %315 = vst.msk [vmem:[#allocation2 + $0x118] sm:$0xff] %vm281_vm0, %v2967_v0  ;;  %v665_v7 = vld [vmem:[%s3146_s24 + $0x8] sm:$0xf]  ;;  %v3197_v10 = vld [vmem:[%s3168_s29 + $0x10] sm:$0xff] }
  0x15   : > { %318 = vst.msk [vmem:[#allocation2 + $0x130] sm:$0xff] %vm281_vm0, %v2967_v0  ;;  %321 = vst.msk [vmem:[#allocation2 + $0x148] sm:$0xff] %vm281_vm0, %v2967_v0  ;;  %v3184_v8 = vld [vmem:[%s3168_s29 + $0x8] sm:$0xff]  ;;  %v3211_v12 = vld [vmem:[%s3168_s29] sm:$0xff] }
  0x16   : > { %324 = vst.msk [vmem:[#allocation2 + $0x160] sm:$0xff] %vm281_vm0, %v2967_v0  ;;  %327 = vst.msk [vmem:[#allocation2 + $0x178] sm:$0xff] %vm281_vm0, %v2967_v0  ;;  %573 = vrot.lane.b32.xlu0 %v565_v4, %s2969_s30  ;;  %571 = vrot.lane.b32.xlu1 %v3159_v3, %s2969_s30  ;;  %v3204_v11 = vld [vmem:[%s3168_s29 + $0x48] sm:$0xff]  ;;  %v3222_v14 = vld [vmem:[%s3168_s29 + $0x20] sm:$0xff] }
  0x17   : > { %330 = vst.msk [vmem:[#allocation2 + $0x190] sm:$0xff] %vm281_vm0, %v2967_v0  ;;  %333 = vst.msk [vmem:[#allocation2 + $0x1a8] sm:$0xff] %vm281_vm0, %v2967_v0  ;;  %v765_v13 = vld [vmem:[%s3146_s24 + $0x8] sm:$0xf]  ;;  %v3229_v16 = vld [vmem:[%s3168_s29 + $0x38] sm:$0xff] }
  0x18   : > { %336 = vst.msk [vmem:[#allocation2 + $0x1c0] sm:$0xff] %vm281_vm0, %v2967_v0  ;;  %339 = vst.msk [vmem:[#allocation2 + $0x1d8] sm:$0xff] %vm281_vm0, %v2967_v0  ;;  %v865_v15 = vld [vmem:[%s3146_s24 + $0x8] sm:$0xf]  ;;  %v3239_v18 = vld [vmem:[%s3168_s29 + $0x40] sm:$0xff] }
  0x19   : > { %342 = vst.msk [vmem:[#allocation2 + $0x1f0] sm:$0xff] %vm281_vm0, %v2967_v0  ;;  %345 = vst.msk [vmem:[#allocation2 + $0x208] sm:$0xff] %vm281_vm0, %v2967_v0  ;;  %v3232_v17 = vld [vmem:[%s3168_s29 + $0x28] sm:$0xff]  ;;  %v3246_v19 = vld [vmem:[%s3168_s29 + $0x18] sm:$0xff] }
  0x1a   : > { %348 = vst.msk [vmem:[#allocation2 + $0x220] sm:$0xff] %vm281_vm0, %v2967_v0  ;;  %351 = vst.msk [vmem:[#allocation2 + $0x238] sm:$0xff] %vm281_vm0, %v2967_v0  ;;  %671 = vrot.lane.b32.xlu1 %v3159_v3, %s2970_s6  ;;  %471 = vrot.lane.b32.xlu0 %v3159_v3, %s2968_s26  ;;  %v3253_v20 = vld [vmem:[%s3168_s29 + $0x30] sm:$0xff]  ;;  %v965_v21 = vld [vmem:[%s3146_s24 + $0x8] sm:$0xf] }
  0x1b   : > { %354 = vst.msk [vmem:[#allocation2 + $0x250] sm:$0xff] %vm281_vm0, %v2967_v0  ;;  %357 = vst.msk [vmem:[#allocation2 + $0x268] sm:$0xff] %vm281_vm0, %v2967_v0  ;;  %v1065_v22 = vld [vmem:[%s3146_s24 + $0x8] sm:$0xf]  ;;  %v3280_v23 = vld [vmem:[%s3168_s29 + $0x10] sm:$0xff] }
  0x1c   : > { %360 = vst.msk [vmem:[#allocation2 + $0x280] sm:$0xff] %vm281_vm0, %v2967_v0  ;;  %363 = vst.msk [vmem:[#allocation2 + $0x298] sm:$0xff] %vm281_vm0, %v2967_v0  ;;  %v3289_v24 = vld [vmem:[%s3168_s29 + $0x38] sm:$0xff]  ;;  %v3299_v26 = vld [vmem:[%s3168_s29 + $0x8] sm:$0xff] }
  0x1d   : > { %366 = vst.msk [vmem:[#allocation2 + $0x2b0] sm:$0xff] %vm281_vm0, %v2967_v0  ;;  %369 = vst.msk [vmem:[#allocation2 + $0x2c8] sm:$0xff] %vm281_vm0, %v2967_v0  ;;  %v3296_v25 = vld [vmem:[%s3168_s29 + $0x18] sm:$0xff]  ;;  %v1165_v27 = vld [vmem:[%s3146_s24 + $0x8] sm:$0xf] }
  0x1e   : > { %372 = vst.msk [vmem:[#allocation2 + $0x2e0] sm:$0xff] %vm281_vm0, %v2967_v0  ;;  %375 = vst.msk [vmem:[#allocation2 + $0x2f8] sm:$0xff] %vm281_vm0, %v2967_v0  ;;  %928 = vrot.lane.b32.xlu1 %v3174_v5, %s2971_s7  ;;  %673 = vrot.lane.b32.xlu0 %v665_v7, %s2970_s6  ;;  %v3307_v28 = vld [vmem:[%s3168_s29 + $0x58] sm:$0xff]  ;;  %v3310_v29 = vld [vmem:[%s3168_s29 + $0x50] sm:$0xff] }
  0x1f   : > { %378 = vst.msk [vmem:[#allocation2 + $0x310] sm:$0xff] %vm281_vm0, %v2967_v0  ;;  %381 = vst.msk [vmem:[#allocation2 + $0x328] sm:$0xff] %vm281_vm0, %v2967_v0  ;;  %v3313_v30 = vld [vmem:[%s3168_s29] sm:$0xff]  ;;  %v3328_v32 = vld [vmem:[%s3168_s29 + $0x30] sm:$0xff] }
  0x20   : > { %384 = vst.msk [vmem:[#allocation2 + $0x340] sm:$0xff] %vm281_vm0, %v2967_v0  ;;  %387 = vst.msk [vmem:[#allocation2 + $0x358] sm:$0xff] %vm281_vm0, %v2967_v0  ;;  %v3325_v31 = vld [vmem:[%s3168_s29 + $0x20] sm:$0xff]  ;;  %v3331_v33 = vld [vmem:[%s3168_s29 + $0x48] sm:$0xff] }
  0x21   : > { %390 = vst.msk [vmem:[#allocation2 + $0x370] sm:$0xff] %vm281_vm0, %v2967_v0  ;;  %393 = vst.msk [vmem:[#allocation2 + $0x388] sm:$0xff] %vm281_vm0, %v2967_v0  ;;  %v3338_v34 = vld [vmem:[%s3168_s29 + $0x28] sm:$0xff]  ;;  %v3347_v35 = vld [vmem:[%s3168_s29 + $0x40] sm:$0xff] }
  0x22   : > { %396 = vst.msk [vmem:[#allocation2 + $0x3a0] sm:$0xff] %vm281_vm0, %v2967_v0  ;;  %399 = vst.msk [vmem:[#allocation2 + $0x3b8] sm:$0xff] %vm281_vm0, %v2967_v0  ;;  %1010 = vrot.lane.b32.xlu1 %v3184_v8, %s2972_s8  ;;  %930 = vrot.lane.b32.xlu0 %v3187_v9, %s2971_s7 }
  0x23   : > { %402 = vst.msk [vmem:[#allocation2 + $0x3d0] sm:$0xff] %vm281_vm0, %v2967_v0  ;;  %405 = vst.msk [vmem:[#allocation2 + $0x3e8] sm:$0xff] %vm281_vm0, %v2967_v0 }
  0x24   : > { %408 = vst.msk [vmem:[#allocation2 + $0x400] sm:$0xff] %vm281_vm0, %v2967_v0  ;;  %411 = vst.msk [vmem:[#allocation2 + $0x418] sm:$0xff] %vm281_vm0, %v2967_v0 }
  0x25   : > { %414 = vst.msk [vmem:[#allocation2 + $0x430] sm:$0xff] %vm281_vm0, %v2967_v0  ;;  %415 = vst [vmem:[#allocation2 + $0x438] sm:$0xff] %v2967_v0 }
  0x26   : > { %416 = vst [vmem:[#allocation2 + $0x440] sm:$0xff] %v2967_v0  ;;  %417 = vst.msk [vmem:[#allocation2 + $0x448] sm:$0xff] %vm281_vm0, %v2967_v0  ;;  %569 = vrot.lane.b32.xlu1 %v3150_v2, %s2969_s30  ;;  %1012 = vrot.lane.b32.xlu0 %v3197_v10, %s2972_s8 }
  0x27   : > { %420 = vst.msk [vmem:[#allocation2 + $0x460] sm:$0xff] %vm281_vm0, %v2967_v0  ;;  %423 = vst.msk [vmem:[#allocation2 + $0x478] sm:$0xff] %vm281_vm0, %v2967_v0 }
  0x28   : > { %436 = vst [vmem:[#allocation2] sm:$0xf] %v3150_v2  ;;  %437 = vst [vmem:[#allocation2 + $0x8] sm:$0xf] %v3159_v3 }
  0x29   : > { %439 = vst.msk [vmem:[#allocation2 + $0x10] sm:$0xf] %vm438_vm1, %v432_v6 }
  0x2a   : > { %926 = vrot.lane.b32.xlu1 %v3204_v11, %s2971_s7  ;;  %669 = vrot.lane.b32.xlu0 %v3150_v2, %s2970_s6  ;;  %454 = vst.msk [vmem:[#allocation2 + $0xe8] sm:$0xff] %vm281_vm0, %v3280_v23  ;;  %463 = vst.msk [vmem:[#allocation2 + $0x130] sm:$0xff] %vm281_vm0, %v3307_v28 }
  0x2b   : > { %457 = vst.msk [vmem:[#allocation2 + $0x100] sm:$0xff] %vm281_vm0, %v3338_v34  ;;  %460 = vst.msk [vmem:[#allocation2 + $0x118] sm:$0xff] %vm281_vm0, %v3347_v35 }
  0x2c   : > { %429 = vst.msk [vmem:[#allocation2 + $0x438] ss:$8 sm:$0x7] %vm426_vm2, %v2976_v39 }
  0x2e   : > { %771 = vrot.lane.b32.xlu1 %v3159_v3, %s2973_s9  ;;  %1008 = vrot.lane.b32.xlu0 %v3211_v12, %s2972_s8 }
  0x2f   : > { %v1297_v50 = vld [vmem:[#allocation2 + $0x8] sm:$0xff]  ;;  %v1296_v51 = vld [vmem:[#allocation2] sm:$0xff] }
  0x32   : > { %871 = vrot.lane.b32.xlu1 %v3159_v3, %s2971_s7  ;;  %773 = vrot.lane.b32.xlu0 %v765_v13, %s2973_s9 }
  0x36   : > { %1016 = vrot.lane.b32.xlu1 %v3222_v14, %s2972_s8  ;;  %873 = vrot.lane.b32.xlu0 %v865_v15, %s2971_s7 }
  0x3a   : > { %1022 = vrot.lane.b32.xlu1 %v3229_v16, %s2972_s8  ;;  %1018 = vrot.lane.b32.xlu0 %v3232_v17, %s2972_s8 }
  0x3e   : > { %769 = vrot.lane.b32.xlu1 %v3150_v2, %s2973_s9  ;;  %1024 = vrot.lane.b32.xlu0 %v3239_v18, %s2972_s8 }
  0x42   : > { %1014 = vrot.lane.b32.xlu1 %v3246_v19, %s2972_s8  ;;  %869 = vrot.lane.b32.xlu0 %v3150_v2, %s2971_s7 }
  0x46   : > { %971 = vrot.lane.b32.xlu1 %v3159_v3, %s2972_s8  ;;  %1020 = vrot.lane.b32.xlu0 %v3253_v20, %s2972_s8 }
  0x4a   : > { %1028 = vrot.lane.b32.xlu1 %v3174_v5, %s2972_s8  ;;  %973 = vrot.lane.b32.xlu0 %v965_v21, %s2972_s8 }
  0x4e   : > { %1071 = vrot.lane.b32.xlu1 %v3159_v3, %s2974_s10  ;;  %1030 = vrot.lane.b32.xlu0 %v3187_v9, %s2972_s8 }
  0x52   : > { %1110 = vrot.lane.b32.xlu1 %v3184_v8, %s2974_s10  ;;  %1073 = vrot.lane.b32.xlu0 %v1065_v22, %s2974_s10 }
  0x56   : > { %969 = vrot.lane.b32.xlu1 %v3150_v2, %s2972_s8  ;;  %1112 = vrot.lane.b32.xlu0 %v3197_v10, %s2974_s10 }
  0x5a   : > { %1069 = vrot.lane.b32.xlu1 %v3150_v2, %s2974_s10  ;;  %1026 = vrot.lane.b32.xlu0 %v3204_v11, %s2972_s8 }
  0x5e   : > { %1116 = vrot.lane.b32.xlu1 %v3222_v14, %s2974_s10  ;;  %1108 = vrot.lane.b32.xlu0 %v3211_v12, %s2974_s10 }
  0x62   : > { %1122 = vrot.lane.b32.xlu1 %v3229_v16, %s2974_s10  ;;  %1118 = vrot.lane.b32.xlu0 %v3232_v17, %s2974_s10 }
  0x66   : > { %1171 = vrot.lane.b32.xlu1 %v3159_v3, %s2975_s11  ;;  %1124 = vrot.lane.b32.xlu0 %v3239_v18, %s2974_s10 }
  0x6a   : > { %1114 = vrot.lane.b32.xlu1 %v3246_v19, %s2974_s10  ;;  %1173 = vrot.lane.b32.xlu0 %v1165_v27, %s2975_s11  ;;  %v2977_v27 = vmov 0  }
  0x6b   : > { %1825 = vmatprep.mubr.bf16.mxu1 %v2977_v27 }
  0x6e   : > { %1169 = vrot.lane.b32.xlu1 %v3150_v2, %s2975_s11  ;;  %1120 = vrot.lane.b32.xlu0 %v3253_v20, %s2974_s10 }
  0x72   : > { %1130 = vrot.lane.b32.xlu1 %v3187_v9, %s2974_s10  ;;  %1128 = vrot.lane.b32.xlu0 %v3174_v5, %s2974_s10 }
  0x76   : > { %1212 = vrot.lane.b32.xlu1 %v3197_v10, %s2975_s11  ;;  %1210 = vrot.lane.b32.xlu0 %v3184_v8, %s2975_s11 }
  0x7a   : > { %1208 = vrot.lane.b32.xlu1 %v3211_v12, %s2975_s11  ;;  %1126 = vrot.lane.b32.xlu0 %v3204_v11, %s2974_s10 }
  0x7e   : > { %512 = vrot.lane.b32.xlu1 %v3197_v10, %s2968_s26  ;;  %510 = vrot.lane.b32.xlu0 %v3184_v8, %s2968_s26 }
  0x82   : > { %1218 = vrot.lane.b32.xlu1 %v3232_v17, %s2975_s11  ;;  %1216 = vrot.lane.b32.xlu0 %v3222_v14, %s2975_s11 }
  0x84   : > { %v474_v37 = vpop.permute.xlu0 %473  ;;  %v470_v38 = vpop.permute.xlu1 %469 }
  0x85   : > { %483 = vst.msk [vmem:[#allocation2 + $0x28] sm:$0xf] %vm438_vm1, %v474_v37 }
  0x86   : > { %1224 = vrot.lane.b32.xlu1 %v3239_v18, %s2975_s11  ;;  %1222 = vrot.lane.b32.xlu0 %v3229_v16, %s2975_s11 }
  0x88   : > { %v574_v40 = vpop.permute.xlu0 %573  ;;  %v572_v41 = vpop.permute.xlu1 %571 }
  0x89   : > { %583 = vst.msk [vmem:[#allocation2 + $0x40] sm:$0xf] %vm438_vm1, %v574_v40  ;;  %v577_v42 = vsel %vm575_vm3, %v572_v41, %v574_v40 }
  0x8a   : > { %582 = vst [vmem:[#allocation2 + $0x38] sm:$0xf] %v577_v42  ;;  %1214 = vrot.lane.b32.xlu1 %v3246_v19, %s2975_s11  ;;  %508 = vrot.lane.b32.xlu0 %v3211_v12, %s2968_s26 }
  0x8c   : > { %v672_v43 = vpop.permute.xlu1 %671  ;;  %v472_v44 = vpop.permute.xlu0 %471 }
  0x8d   : > { %v476_v45 = vsel %vm475_vm4, %v470_v38, %v472_v44  ;;  %v477_v46 = vsel %vm475_vm4, %v472_v44, %v474_v37 }
  0x8e   : > { %481 = vst [vmem:[#allocation2 + $0x18] sm:$0xf] %v476_v45  ;;  %482 = vst [vmem:[#allocation2 + $0x20] sm:$0xf] %v477_v46  ;;  %516 = vrot.lane.b32.xlu1 %v3222_v14, %s2968_s26  ;;  %1220 = vrot.lane.b32.xlu0 %v3253_v20, %s2975_s11 }
  0x90   : > { %v929_v47 = vpop.permute.xlu1 %928  ;;  %v674_v48 = vpop.permute.xlu0 %673 }
  0x91   : > { %v677_v49 = vsel %vm675_vm5, %v672_v43, %v674_v48  ;;  %683 = vst.msk [vmem:[#allocation2 + $0x58] sm:$0xf] %vm438_vm1, %v674_v48  ;;  %v1303_v63 = vld [vmem:[#allocation2 + $0x38] sm:$0xff] }
  0x92   : > { %682 = vst [vmem:[#allocation2 + $0x50] sm:$0xf] %v677_v49  ;;  %522 = vrot.lane.b32.xlu1 %v3229_v16, %s2968_s26  ;;  %518 = vrot.lane.b32.xlu0 %v3232_v17, %s2968_s26 }
  0x94   : > { %v1011_v52 = vpop.permute.xlu1 %1010  ;;  %v931_v53 = vpop.permute.xlu0 %930 }
  0x95   : > { %v939_v54 = vsel %vm875_vm6, %v929_v47, %v931_v53  ;;  %963 = vst.msk [vmem:[#allocation2 + $0x310] sm:$0xff] %vm281_vm0, %v931_v53  ;;  %v1300_v55 = vld [vmem:[#allocation2 + $0x20] sm:$0xff]  ;;  %v1299_v56 = vld [vmem:[#allocation2 + $0x18] sm:$0xff] }
  0x96   : > { %1228 = vrot.lane.b32.xlu1 %v3174_v5, %s2975_s11  ;;  %524 = vrot.lane.b32.xlu0 %v3239_v18, %s2968_s26  ;;  %v1441_v57 = vpack.c.bf16 %v1300_v55, %v1297_v50  ;;  %v1440_v58 = vpack.c.bf16 %v1299_v56, %v1296_v51 }
  0x98   : > { %v570_v59 = vpop.permute.xlu1 %569  ;;  %v1013_v60 = vpop.permute.xlu0 %1012  ;;  %1640 = vmatprep.subr.bf16.mxu0 %v1441_v57 }
  0x99   : > { %v576_v61 = vsel %vm575_vm3, %v570_v59, %v572_v41  ;;  %v1033_v62 = vsel %vm975_vm7, %v1011_v52, %v1013_v60  ;;  %1054 = vst.msk [vmem:[#allocation2 + $0x328] sm:$0xff] %vm281_vm0, %v1013_v60  ;;  %1641 = vmatpush1.bf16.msra.mxu0 %v1440_v58  ;;  %v1306_v0 = vld [vmem:[#allocation2 + $0x50] sm:$0xff] }
  0x9a   : > { %581 = vst [vmem:[#allocation2 + $0x30] sm:$0xf] %v576_v61  ;;  %514 = vrot.lane.b32.xlu1 %v3246_v19, %s2968_s26  ;;  %1230 = vrot.lane.b32.xlu0 %v3187_v9, %s2975_s11  ;;  %v1444_v1 = vpack.c.bf16 %v1306_v0, %v1303_v63  ;;  %v3399_v2 = vpack.c.bf16 %v1033_v62, %v939_v54 }
  0x9c   : > { %v927_v3 = vpop.permute.xlu1 %926  ;;  %v670_v4 = vpop.permute.xlu0 %669  ;;  %1642 = vmatprep.subr.bf16.mxu0 %v1444_v1  ;;  %2737 = vmatprep.subr.bf16.mxu1 %v3399_v2 }
  0x9d   : > { %v938_v6 = vsel %vm875_vm6, %v927_v3, %v929_v47  ;;  %v676_v7 = vsel %vm675_vm5, %v670_v4, %v672_v43 }
  0x9e   : > { %681 = vst [vmem:[#allocation2 + $0x48] sm:$0xf] %v676_v7  ;;  %1226 = vrot.lane.b32.xlu1 %v3204_v11, %s2975_s11  ;;  %520 = vrot.lane.b32.xlu0 %v3253_v20, %s2968_s26 }
  0xa0   : > { %v772_v13 = vpop.permute.xlu1 %771  ;;  %v1009_v15 = vpop.permute.xlu0 %1008 }
  0xa1   : > { %v1032_v21 = vsel %vm975_vm7, %v1009_v15, %v1011_v52  ;;  %v1302_v39 = vld [vmem:[#allocation2 + $0x30] sm:$0xff] }
  0xa2   : > { %530 = vrot.lane.b32.xlu1 %v3187_v9, %s2968_s26  ;;  %528 = vrot.lane.b32.xlu0 %v3174_v5, %s2968_s26  ;;  %v3413_v22 = vpack.c.bf16 %v1032_v21, %v938_v6 }
  0xa4   : > { %v872_v36 = vpop.permute.xlu1 %871  ;;  %v774_v37 = vpop.permute.xlu0 %773  ;;  %2745 = vmatpush1.bf16.msra.mxu1 %v3413_v22 }
  0xa5   : > { %v777_v38 = vsel %vm775_vm8, %v772_v13, %v774_v37  ;;  %783 = vst.msk [vmem:[#allocation2 + $0x70] sm:$0xf] %vm438_vm1, %v774_v37  ;;  %v1305_v40 = vld [vmem:[#allocation2 + $0x48] sm:$0xff] }
  0xa6   : > { %782 = vst [vmem:[#allocation2 + $0x68] sm:$0xf] %v777_v38  ;;  %612 = vrot.lane.b32.xlu1 %v3197_v10, %s2969_s30  ;;  %610 = vrot.lane.b32.xlu0 %v3184_v8, %s2969_s30  ;;  %v1443_v41 = vpack.c.bf16 %v1305_v40, %v1302_v39 }
  0xa8   : > { %v1017_v42 = vpop.permute.xlu1 %1016  ;;  %v874_v43 = vpop.permute.xlu0 %873  ;;  %1643 = vmatpush1.bf16.msra.mxu0 %v1443_v41 }
  0xa9   : > { %v877_v44 = vsel %vm875_vm6, %v872_v36, %v874_v43  ;;  %883 = vst.msk [vmem:[#allocation2 + $0x88] sm:$0xf] %vm438_vm1, %v874_v43 }
  0xaa   : > { %882 = vst [vmem:[#allocation2 + $0x80] sm:$0xf] %v877_v44  ;;  %608 = vrot.lane.b32.xlu1 %v3211_v12, %s2969_s30  ;;  %526 = vrot.lane.b32.xlu0 %v3204_v11, %s2968_s26 }
  0xac   : > { %v1023_v45 = vpop.permute.xlu1 %1022  ;;  %v1019_v46 = vpop.permute.xlu0 %1018 }
  0xad   : > { %v1035_v47 = vsel %vm975_vm7, %v1017_v42, %v1019_v46  ;;  %1057 = vst.msk [vmem:[#allocation2 + $0x340] sm:$0xff] %vm281_vm0, %v1019_v46  ;;  %v1309_v52 = vld [vmem:[#allocation2 + $0x68] sm:$0xff] }
  0xae   : > { %618 = vrot.lane.b32.xlu1 %v3232_v17, %s2969_s30  ;;  %616 = vrot.lane.b32.xlu0 %v3222_v14, %s2969_s30 }
  0xb0   : > { %v770_v48 = vpop.permute.xlu1 %769  ;;  %v1025_v49 = vpop.permute.xlu0 %1024 }
  0xb1   : > { %v776_v50 = vsel %vm775_vm8, %v770_v48, %v772_v13  ;;  %v1037_v51 = vsel %vm975_vm7, %v1023_v45, %v1025_v49  ;;  %1060 = vst.msk [vmem:[#allocation2 + $0x358] sm:$0xff] %vm281_vm0, %v1025_v49  ;;  %v1312_v53 = vld [vmem:[#allocation2 + $0x80] sm:$0xff] }
  0xb2   : > { %781 = vst [vmem:[#allocation2 + $0x60] sm:$0xf] %v776_v50  ;;  %624 = vrot.lane.b32.xlu1 %v3239_v18, %s2969_s30  ;;  %622 = vrot.lane.b32.xlu0 %v3229_v16, %s2969_s30  ;;  %v1447_v54 = vpack.c.bf16 %v1312_v53, %v1309_v52  ;;  %v3442_v55 = vpack.c.bf16 %v1037_v51, %v1035_v47 }
  0xb4   : > { %v1015_v56 = vpop.permute.xlu1 %1014  ;;  %v870_v57 = vpop.permute.xlu0 %869  ;;  %1644 = vmatprep.subr.bf16.mxu0 %v1447_v54  ;;  %2738 = vmatprep.subr.bf16.mxu1 %v3442_v55 }
  0xb5   : > { %v1034_v58 = vsel %vm975_vm7, %v1015_v56, %v1017_v42  ;;  %v876_v59 = vsel %vm875_vm6, %v870_v57, %v872_v36 }
  0xb6   : > { %881 = vst [vmem:[#allocation2 + $0x78] sm:$0xf] %v876_v59  ;;  %620 = vrot.lane.b32.xlu1 %v3253_v20, %s2969_s30  ;;  %614 = vrot.lane.b32.xlu0 %v3246_v19, %s2969_s30 }
  0xb8   : > { %v972_v60 = vpop.permute.xlu1 %971  ;;  %v1021_v61 = vpop.permute.xlu0 %1020 }
  0xb9   : > { %v1036_v62 = vsel %vm975_vm7, %v1021_v61, %v1023_v45  ;;  %v1308_v4 = vld [vmem:[#allocation2 + $0x60] sm:$0xff] }
  0xba   : > { %630 = vrot.lane.b32.xlu1 %v3187_v9, %s2969_s30  ;;  %628 = vrot.lane.b32.xlu0 %v3174_v5, %s2969_s30  ;;  %v3456_v63 = vpack.c.bf16 %v1036_v62, %v1034_v58 }
  0xbc   : > { %v1029_v0 = vpop.permute.xlu1 %1028  ;;  %v974_v1 = vpop.permute.xlu0 %973  ;;  %2746 = vmatpush1.bf16.msra.mxu1 %v3456_v63 }
  0xbd   : > { %v977_v3 = vsel %vm975_vm7, %v972_v60, %v974_v1  ;;  %983 = vst.msk [vmem:[#allocation2 + $0xa0] sm:$0xf] %vm438_vm1, %v974_v1  ;;  %v1311_v6 = vld [vmem:[#allocation2 + $0x78] sm:$0xff] }
  0xbe   : > { %982 = vst [vmem:[#allocation2 + $0x98] sm:$0xf] %v977_v3  ;;  %712 = vrot.lane.b32.xlu1 %v3197_v10, %s2970_s6  ;;  %710 = vrot.lane.b32.xlu0 %v3184_v8, %s2970_s6  ;;  %v1446_v7 = vpack.c.bf16 %v1311_v6, %v1308_v4 }
  0xc0   : > { %v1072_v13 = vpop.permute.xlu1 %1071  ;;  %v1031_v15 = vpop.permute.xlu0 %1030  ;;  %1645 = vmatpush1.bf16.msra.mxu0 %v1446_v7 }
  0xc1   : > { %v1039_v21 = vsel %vm975_vm7, %v1029_v0, %v1031_v15  ;;  %1063 = vst.msk [vmem:[#allocation2 + $0x370] sm:$0xff] %vm281_vm0, %v1031_v15 }
  0xc2   : > { %708 = vrot.lane.b32.xlu1 %v3211_v12, %s2970_s6  ;;  %626 = vrot.lane.b32.xlu0 %v3204_v11, %s2969_s30 }
  0xc4   : > { %v1111_v36 = vpop.permute.xlu1 %1110  ;;  %v1074_v37 = vpop.permute.xlu0 %1073 }
  0xc5   : > { %v1077_v38 = vsel %vm1075_vm9, %v1072_v13, %v1074_v37  ;;  %1083 = vst.msk [vmem:[#allocation2 + $0xb8] sm:$0xf] %vm438_vm1, %v1074_v37  ;;  %v1315_v48 = vld [vmem:[#allocation2 + $0x98] sm:$0xff]  ;;  %v1456_v37 = vpack.c.bf16 %v3289_v24, %v3325_v31 }
  0xc6   : > { %1082 = vst [vmem:[#allocation2 + $0xb0] sm:$0xf] %v1077_v38  ;;  %718 = vrot.lane.b32.xlu1 %v3232_v17, %s2970_s6  ;;  %716 = vrot.lane.b32.xlu0 %v3222_v14, %s2970_s6 }
  0xc8   : > { %v970_v39 = vpop.permute.xlu1 %969  ;;  %v1113_v40 = vpop.permute.xlu0 %1112 }
  0xc9   : > { %v976_v41 = vsel %vm975_vm7, %v970_v39, %v972_v60  ;;  %v1133_v42 = vsel %vm1075_vm9, %v1111_v36, %v1113_v40  ;;  %1154 = vst.msk [vmem:[#allocation2 + $0x388] sm:$0xff] %vm281_vm0, %v1113_v40 }
  0xca   : > { %981 = vst [vmem:[#allocation2 + $0x90] sm:$0xf] %v976_v41  ;;  %724 = vrot.lane.b32.xlu1 %v3239_v18, %s2970_s6  ;;  %722 = vrot.lane.b32.xlu0 %v3229_v16, %s2970_s6  ;;  %v3484_v43 = vpack.c.bf16 %v1133_v42, %v1039_v21  ;;  %v1455_v41 = vpack.c.bf16 %v3328_v32, %v3296_v25 }
  0xcc   : > { %v1070_v44 = vpop.permute.xlu1 %1069  ;;  %v1027_v45 = vpop.permute.xlu0 %1026  ;;  %2739 = vmatprep.subr.bf16.mxu1 %v3484_v43 }
  0xcd   : > { %v1076_v46 = vsel %vm1075_vm9, %v1070_v44, %v1072_v13  ;;  %v1038_v47 = vsel %vm975_vm7, %v1027_v45, %v1029_v0  ;;  %v1318_v49 = vld [vmem:[#allocation2 + $0xb0] sm:$0xff] }
  0xce   : > { %1081 = vst [vmem:[#allocation2 + $0xa8] sm:$0xf] %v1076_v46  ;;  %720 = vrot.lane.b32.xlu1 %v3253_v20, %s2970_s6  ;;  %714 = vrot.lane.b32.xlu0 %v3246_v19, %s2970_s6  ;;  %v1450_v16 = vpack.c.bf16 %v1318_v49, %v1315_v48  ;;  %v3572_v49 = vld [vmem:[%s3974_s2 + $0x4] ss:$12 sps:$4 sm:$0xff]  }
  0xcf   : > { %1672 = vmatprep.mubr.bf16.mxu0 %v3572_v49 }
  0xd0   : > { %v1117_v50 = vpop.permute.xlu1 %1116  ;;  %v1109_v51 = vpop.permute.xlu0 %1108  ;;  %1646 = vmatprep.subr.bf16.mxu0 %v1450_v16 }
  0xd1   : > { %v1132_v52 = vsel %vm1075_vm9, %v1109_v51, %v1111_v36  ;;  %v1314_v57 = vld [vmem:[#allocation2 + $0x90] sm:$0xff] }
  0xd2   : > { %730 = vrot.lane.b32.xlu1 %v3187_v9, %s2970_s6  ;;  %728 = vrot.lane.b32.xlu0 %v3174_v5, %s2970_s6  ;;  %v3498_v53 = vpack.c.bf16 %v1132_v52, %v1038_v47 }
  0xd4   : > { %v1123_v54 = vpop.permute.xlu1 %1122  ;;  %v1119_v56 = vpop.permute.xlu0 %1118  ;;  %2747 = vmatpush1.bf16.msra.mxu1 %v3498_v53 }
  0xd5   : > { %v1135_v19 = vsel %vm1075_vm9, %v1117_v50, %v1119_v56  ;;  %1157 = vst.msk [vmem:[#allocation2 + $0x3a0] sm:$0xff] %vm281_vm0, %v1119_v56  ;;  %v1317_v58 = vld [vmem:[#allocation2 + $0xa8] sm:$0xff] }
  0xd6   : > { %812 = vrot.lane.b32.xlu1 %v3197_v10, %s2973_s9  ;;  %810 = vrot.lane.b32.xlu0 %v3184_v8, %s2973_s9  ;;  %v1449_v9 = vpack.c.bf16 %v1317_v58, %v1314_v57 }
  0xd8   : > { %v1172_v5 = vpop.permute.xlu1 %1171  ;;  %v1125_v59 = vpop.permute.xlu0 %1124  ;;  %1647 = vmatpush1.bf16.msra.mxu0 %v1449_v9 }
  0xd9   : > { %v1137_v60 = vsel %vm1075_vm9, %v1123_v54, %v1125_v59  ;;  %1160 = vst.msk [vmem:[#allocation2 + $0x3b8] sm:$0xff] %vm281_vm0, %v1125_v59 }
  0xda   : > { %808 = vrot.lane.b32.xlu1 %v3211_v12, %s2973_s9  ;;  %726 = vrot.lane.b32.xlu0 %v3204_v11, %s2970_s6  ;;  %v3513_v61 = vpack.c.bf16 %v1137_v60, %v1135_v19  ;;  %v1432_v60 = vld [vmem:[#allocation2 + $0x440] sm:$0xff] }
  0xdc   : > { %v1115_v10 = vpop.permute.xlu1 %1114  ;;  %v1174_v62 = vpop.permute.xlu0 %1173  ;;  %2740 = vmatprep.subr.bf16.mxu1 %v3513_v61 }
  0xdd   : > { %v1134_v8 = vsel %vm1075_vm9, %v1115_v10, %v1117_v50  ;;  %v1177_v0 = vsel %vm1175_vm10, %v1172_v5, %v1174_v62  ;;  %1183 = vst.msk [vmem:[#allocation2 + $0xd0] sm:$0xf] %vm438_vm1, %v1174_v62 }
  0xde   : > { %1182 = vst [vmem:[#allocation2 + $0xc8] sm:$0xf] %v1177_v0  ;;  %818 = vrot.lane.b32.xlu1 %v3232_v17, %s2973_s9  ;;  %816 = vrot.lane.b32.xlu0 %v3222_v14, %s2973_s9 }
  0xe0   : > { %v1170_v11 = vpop.permute.xlu1 %1169  ;;  %v1121_v12 = vpop.permute.xlu0 %1120 }
  0xe1   : > { %v1176_v1 = vsel %vm1175_vm10, %v1170_v11, %v1172_v5  ;;  %v1136_v3 = vsel %vm1075_vm9, %v1121_v12, %v1123_v54  ;;  %v1431_v12 = vld [vmem:[#allocation2 + $0x438] sm:$0xff] }
  0xe2   : > { %1181 = vst [vmem:[#allocation2 + $0xc0] sm:$0xf] %v1176_v1  ;;  %824 = vrot.lane.b32.xlu1 %v3239_v18, %s2973_s9  ;;  %822 = vrot.lane.b32.xlu0 %v3289_v24, %s2973_s9  ;;  %v3529_v4 = vpack.c.bf16 %v1136_v3, %v1134_v8 }
  0xe4   : > { %v1131_v6 = vpop.permute.xlu1 %1130  ;;  %v1129_v17 = vpop.permute.xlu0 %1128  ;;  %2748 = vmatpush1.bf16.msra.mxu1 %v3529_v4 }
  0xe5   : > { %1163 = vst.msk [vmem:[#allocation2 + $0x3d0] sm:$0xff] %vm281_vm0, %v1131_v6  ;;  %v1139_v14 = vsel %vm1075_vm9, %v1129_v17, %v1131_v6  ;;  %v1321_v7 = vld [vmem:[#allocation2 + $0xc8] sm:$0xff] }
  0xe6   : > { %820 = vrot.lane.b32.xlu1 %v3253_v20, %s2973_s9  ;;  %814 = vrot.lane.b32.xlu0 %v3296_v25, %s2973_s9  ;;  %v1453_v18 = vpack.c.bf16 %v3299_v26, %v1321_v7 }
  0xe8   : > { %v1213_v13 = vpop.permute.xlu1 %1212  ;;  %v1211_v15 = vpop.permute.xlu0 %1210  ;;  %1648 = vmatprep.subr.bf16.mxu0 %v1453_v18 }
  0xe9   : > { %1254 = vst.msk [vmem:[#allocation2 + $0x3e8] sm:$0xff] %vm281_vm0, %v1213_v13  ;;  %v1233_v21 = vsel %vm1175_vm10, %v1211_v15, %v1213_v13  ;;  %v1320_v36 = vld [vmem:[#allocation2 + $0xc0] sm:$0xff] }
  0xea   : > { %830 = vrot.lane.b32.xlu1 %v3307_v28, %s2973_s9  ;;  %828 = vrot.lane.b32.xlu0 %v3310_v29, %s2973_s9  ;;  %v1452_v20 = vpack.c.bf16 %v3313_v30, %v1320_v36  ;;  %v3548_v38 = vpack.c.bf16 %v1233_v21, %v1139_v14  ;;  %v2978_v21 = vmov 0.0|0.0   ;;  %v3622_v36 = vld [vmem:[%s3974_s2 + $0x68] ss:$12 sps:$4 sm:$0xff]  }
  0xec   : > { %v1209_v39 = vpop.permute.xlu1 %1208  ;;  %v1127_v40 = vpop.permute.xlu0 %1126  ;;  %1649 = vmatpush1.bf16.msra.mxu0 %v1452_v20  ;;  %2741 = vmatprep.subr.bf16.mxu1 %v3548_v38 }
  0xed   : > { %v1232_v42 = vsel %vm1175_vm10, %v1209_v39, %v1211_v15  ;;  %v1138_v44 = vsel %vm1075_vm9, %v1127_v40, %v1129_v17  ;;  %1650 = vmatprep.subr.bf16.mxu0 %v1456_v37 }
  0xee   : > { %912 = vrot.lane.b32.xlu1 %v3280_v23, %s2971_s7  ;;  %910 = vrot.lane.b32.xlu0 %v3299_v26, %s2971_s7  ;;  %v3559_v28 = vpack.c.bf16 %v1232_v42, %v1138_v44 }
  0xf0   : > { %v513_v45 = vpop.permute.xlu1 %512  ;;  %v511_v46 = vpop.permute.xlu0 %510  ;;  %2749 = vmatpush1.bf16.msra.mxu1 %v3559_v28  ;;  %1651 = vmatpush1.bf16.msra.mxu0 %v1455_v41 }
  0xf1   : > { %554 = vst.msk [vmem:[#allocation2 + $0x148] sm:$0xff] %vm281_vm0, %v513_v45  ;;  %v533_v47 = vsel %vm475_vm4, %v511_v46, %v513_v45 }
  0xf2   : > { %908 = vrot.lane.b32.xlu1 %v3313_v30, %s2971_s7  ;;  %826 = vrot.lane.b32.xlu0 %v3331_v33, %s2973_s9  ;;  %v1459_v23 = vpack.c.bf16 %v533_v47, %v3310_v29  ;;  %v1298_v47 = vld [vmem:[#allocation2 + $0x10] sm:$0xff] }
  0xf4   : > { %v1219_v26 = vpop.permute.xlu1 %1218  ;;  %v1217_v48 = vpop.permute.xlu0 %1216  ;;  %1652 = vmatprep.subr.bf16.mxu0 %v1459_v23  ;;  %v1301_v23 = vld [vmem:[#allocation2 + $0x28] sm:$0xff] }
  0xf5   : > { %1257 = vst.msk [vmem:[#allocation2 + $0x400] sm:$0xff] %vm281_vm0, %v1219_v26  ;;  %v1235_v16 = vsel %vm1175_vm10, %v1217_v48, %v1219_v26  ;;  %v3634_v26 = vld [vmem:[%s3974_s2 + $0x80] ss:$12 sps:$4 sm:$0xff]  }
  0xf6   : > { %918 = vrot.lane.b32.xlu1 %v3338_v34, %s2971_s7  ;;  %916 = vrot.lane.b32.xlu0 %v3325_v31, %s2971_s7 }
  0xf8   : > { %v1225_v29 = vpop.permute.xlu1 %1224  ;;  %v1223_v30 = vpop.permute.xlu0 %1222 }
  0xf9   : > { %1260 = vst.msk [vmem:[#allocation2 + $0x418] sm:$0xff] %vm281_vm0, %v1225_v29  ;;  %v1237_v50 = vsel %vm1175_vm10, %v1223_v30, %v1225_v29 }
  0xfa   : > { %924 = vrot.lane.b32.xlu1 %v3347_v35, %s2971_s7  ;;  %922 = vrot.lane.b32.xlu0 %v3289_v24, %s2971_s7  ;;  %v3587_v51 = vpack.c.bf16 %v1237_v50, %v1235_v16 }
  0xfc   : > { %v1215_v34 = vpop.permute.xlu1 %1214  ;;  %v509_v52 = vpop.permute.xlu0 %508  ;;  %2742 = vmatprep.subr.bf16.mxu1 %v3587_v51 }
  0xfd   : > { %v1234_v31 = vsel %vm1175_vm10, %v1215_v34, %v1217_v48  ;;  %v532_v54 = vsel %vm475_vm4, %v509_v52, %v511_v46  ;;  %v1442_v52 = vpack.c.bf16 %v1301_v23, %v1298_v47  ;;  %v1310_v47 = vld [vmem:[#allocation2 + $0x70] sm:$0xff] }
  0xfe   : > { %920 = vrot.lane.b32.xlu1 %v3328_v32, %s2971_s7  ;;  %914 = vrot.lane.b32.xlu0 %v3296_v25, %s2971_s7  ;;  %v1458_v35 = vpack.c.bf16 %v532_v54, %v3331_v33 }
 0x100   : > { %v517_v56 = vpop.permute.xlu1 %516  ;;  %v1221_v24 = vpop.permute.xlu0 %1220  ;;  %1653 = vmatpush1.bf16.msra.mxu0 %v1458_v35 }
 0x101   : > { %v1236_v19 = vsel %vm1175_vm10, %v1221_v24, %v1223_v30  ;;  %v3645_v24 = vld [vmem:[%s3974_s2 + $0x98] ss:$12 sps:$4 sm:$0xff]  }
 0x102   : > { %v3598_v57 = vpack.c.bf16 %v1236_v19, %v1234_v31 }
 0x104   : > { %v523_v58 = vpop.permute.xlu1 %522  ;;  %v519_v9 = vpop.permute.xlu0 %518  ;;  %2750 = vmatpush1.bf16.msra.mxu1 %v3598_v57 }
 0x105   : > { %v535_v5 = vsel %vm475_vm4, %v517_v56, %v519_v9  ;;  %557 = vst.msk [vmem:[#allocation2 + $0x160] sm:$0xff] %vm281_vm0, %v519_v9 }
 0x108   : > { %v1229_v32 = vpop.permute.xlu1 %1228  ;;  %v525_v59 = vpop.permute.xlu0 %524 }
 0x109   : > { %v537_v25 = vsel %vm475_vm4, %v523_v58, %v525_v59  ;;  %560 = vst.msk [vmem:[#allocation2 + $0x178] sm:$0xff] %vm281_vm0, %v525_v59  ;;  %v1307_v59 = vld [vmem:[#allocation2 + $0x58] sm:$0xff] }
 0x10a   : > { %v1462_v33 = vpack.c.bf16 %v537_v25, %v535_v5 }
 0x10c   : > { %v515_v10 = vpop.permute.xlu1 %514  ;;  %v1231_v62 = vpop.permute.xlu0 %1230  ;;  %1654 = vmatprep.subr.bf16.mxu0 %v1462_v33 }
 0x10d   : > { %v534_v8 = vsel %vm475_vm4, %v515_v10, %v517_v56  ;;  %v1239_v0 = vsel %vm1175_vm10, %v1229_v32, %v1231_v62  ;;  %1263 = vst.msk [vmem:[#allocation2 + $0x430] sm:$0xff] %vm281_vm0, %v1231_v62 }
 0x10e   : > { %v3608_v11 = vpack.c.bf16 %v1432_v60, %v1239_v0  ;;  %v1304_v0 = vld [vmem:[#allocation2 + $0x40] sm:$0xff] }
 0x110   : > { %v1227_v1 = vpop.permute.xlu1 %1226  ;;  %v521_v3 = vpop.permute.xlu0 %520  ;;  %2743 = vmatprep.subr.bf16.mxu1 %v3608_v11 }
 0x111   : > { %v1238_v6 = vsel %vm1175_vm10, %v1227_v1, %v1229_v32  ;;  %v536_v17 = vsel %vm475_vm4, %v521_v3, %v523_v58  ;;  %v3656_v1 = vld [vmem:[%s3974_s2 + $0xb0] ss:$12 sps:$4 sm:$0xff]  }
 0x112   : > { %v3613_v14 = vpack.c.bf16 %v1431_v12, %v1238_v6  ;;  %v1461_v7 = vpack.c.bf16 %v536_v17, %v534_v8  ;;  %v1445_v12 = vpack.c.bf16 %v1307_v59, %v1304_v0 }
 0x114   : > { %v531_v18 = vpop.permute.xlu1 %530  ;;  %v529_v13 = vpop.permute.xlu0 %528  ;;  %2751 = vmatpush1.bf16.msra.mxu1 %v3613_v14  ;;  %1655 = vmatpush1.bf16.msra.mxu0 %v1461_v7 }
 0x115   : > { %563 = vst.msk [vmem:[#allocation2 + $0x190] sm:$0xff] %vm281_vm0, %v531_v18  ;;  %v539_v15 = vsel %vm475_vm4, %v529_v13, %v531_v18  ;;  %2744 = vmatprep.subr.bf16.mxu1 %v2978_v21 }
 0x118   : > { %v613_v37 = vpop.permute.xlu1 %612  ;;  %v611_v20 = vpop.permute.xlu0 %610  ;;  %2752 = vmatpush1.bf16.msra.mxu1 %v2978_v21 }
 0x119   : > { %654 = vst.msk [vmem:[#allocation2 + $0x1a8] sm:$0xff] %vm281_vm0, %v613_v37  ;;  %v633_v39 = vsel %vm575_vm3, %v611_v20, %v613_v37 }
 0x11a   : > { %v1465_v40 = vpack.c.bf16 %v633_v39, %v539_v15  ;;  %v1313_v39 = vld [vmem:[#allocation2 + $0x88] sm:$0xff] }
 0x11b   : > { %1826 = vmatmul.mubr.bf16.vlgmr.msra.gmra.mrb[0].mxu1 %v3622_v36  ;;  %v1448_v23 = vpack.c.bf16 %v1313_v39, %v1310_v47 }
 0x11c   : > { %v609_v41 = vpop.permute.xlu1 %608  ;;  %v527_v42 = vpop.permute.xlu0 %526  ;;  %1656 = vmatprep.subr.bf16.mxu0 %v1465_v40  ;;  %1835 = vmatprep.mubr.bf16.mxu1 %v2977_v27  ;;  %v1346_v29 = vld [vmem:[#allocation2 + $0x190] sm:$0xff] }
 0x11d   : > { %v632_v44 = vsel %vm575_vm3, %v609_v41, %v611_v20  ;;  %v538_v45 = vsel %vm475_vm4, %v527_v42, %v529_v13 }
 0x11e   : > { %v1464_v46 = vpack.c.bf16 %v632_v44, %v538_v45 }
 0x120   : > { %v619_v48 = vpop.permute.xlu1 %618  ;;  %v617_v16 = vpop.permute.xlu0 %616  ;;  %v1349_v30 = vld [vmem:[#allocation2 + $0x1a8] sm:$0xff]  ;;  %1657 = vmatpush1.bf16.msra.mxu0 %v1464_v46 }
 0x121   : > { %657 = vst.msk [vmem:[#allocation2 + $0x1c0] sm:$0xff] %vm281_vm0, %v619_v48  ;;  %v635_v50 = vsel %vm575_vm3, %v617_v16, %v619_v48  ;;  %v1466_v34 = vpack.c.bf16 %v1349_v30, %v1346_v29 }
 0x123   : > { %2625 = vmatprep.subr.bf16.mxu1 %v1466_v34  ;;  %1836 = vmatmul.mubr.bf16.gmra.mrb[4].mxu1 %v3634_v26 }
 0x124   : > { %v625_v31 = vpop.permute.xlu1 %624  ;;  %v623_v54 = vpop.permute.xlu0 %622  ;;  %2626 = vmatpush3.bf16.msra.mxu1 %v1442_v52  ;;  %1845 = vmatprep.mubr.bf16.mxu1 %v2977_v27 }
 0x125   : > { %660 = vst.msk [vmem:[#allocation2 + $0x1d8] sm:$0xff] %vm281_vm0, %v625_v31  ;;  %v637_v35 = vsel %vm575_vm3, %v623_v54, %v625_v31 }
 0x126   : > { %v1468_v56 = vpack.c.bf16 %v637_v35, %v635_v50 }
 0x128   : > { %v621_v19 = vpop.permute.xlu1 %620  ;;  %v615_v58 = vpop.permute.xlu0 %614  ;;  %1658 = vmatprep.subr.bf16.mxu0 %v1468_v56  ;;  %v1352_v60 = vld [vmem:[#allocation2 + $0x1c0] sm:$0xff] }
 0x129   : > { %v636_v9 = vsel %vm575_vm3, %v621_v19, %v623_v54  ;;  %v634_v5 = vsel %vm575_vm3, %v615_v58, %v617_v16  ;;  %v1319_v54 = vld [vmem:[#allocation2 + $0xb8] sm:$0xff] }
 0x12a   : > { %v1467_v32 = vpack.c.bf16 %v636_v9, %v634_v5 }
 0x12b   : > { %1846 = vmatmul.mubr.bf16.gmra.mrb[8].mxu1 %v3645_v24 }
 0x12c   : > { %v631_v25 = vpop.permute.xlu1 %630  ;;  %v629_v33 = vpop.permute.xlu0 %628  ;;  %v1355_v10 = vld [vmem:[#allocation2 + $0x1d8] sm:$0xff]  ;;  %1659 = vmatpush1.bf16.msra.mxu0 %v1467_v32  ;;  %1855 = vmatprep.mubr.bf16.mxu1 %v2977_v27  ;;  %v1316_v32 = vld [vmem:[#allocation2 + $0xa0] sm:$0xff] }
 0x12d   : > { %663 = vst.msk [vmem:[#allocation2 + $0x1f0] sm:$0xff] %vm281_vm0, %v631_v25  ;;  %v639_v62 = vsel %vm575_vm3, %v629_v33, %v631_v25  ;;  %v1469_v8 = vpack.c.bf16 %v1355_v10, %v1352_v60  ;;  %v1451_v59 = vpack.c.bf16 %v1319_v54, %v1316_v32 }
 0x12f   : > { %2627 = vmatprep.subr.bf16.mxu1 %v1469_v8 }
 0x130   : > { %v713_v3 = vpop.permute.xlu1 %712  ;;  %v711_v6 = vpop.permute.xlu0 %710  ;;  %2628 = vmatpush3.bf16.msra.mxu1 %v1445_v12 }
 0x131   : > { %754 = vst.msk [vmem:[#allocation2 + $0x208] sm:$0xff] %vm281_vm0, %v713_v3  ;;  %v733_v17 = vsel %vm675_vm5, %v711_v6, %v713_v3 }
 0x132   : > { %v1471_v7 = vpack.c.bf16 %v733_v17, %v639_v62  ;;  %v1325_v17 = vld [vmem:[#allocation2 + $0xe8] sm:$0xff] }
 0x133   : > { %1856 = vmatmul.mubr.bf16.gmra.mrb[12].mxu1 %v3656_v1 }
 0x134   : > { %v709_v18 = vpop.permute.xlu1 %708  ;;  %v627_v13 = vpop.permute.xlu0 %626  ;;  %1660 = vmatprep.subr.bf16.mxu0 %v1471_v7  ;;  %1898 = vmatprep.mubr.bf16.mxu1 %v3572_v49  ;;  %v1358_v42 = vld [vmem:[#allocation2 + $0x1f0] sm:$0xff] }
 0x135   : > { %v732_v15 = vsel %vm675_vm5, %v709_v18, %v711_v6  ;;  %v638_v37 = vsel %vm575_vm3, %v627_v13, %v629_v33  ;;  %v1322_v6 = vld [vmem:[#allocation2 + $0xd0] sm:$0xff] }
 0x136   : > { %v1470_v20 = vpack.c.bf16 %v732_v15, %v638_v37  ;;  %v1454_v39 = vpack.c.bf16 %v1325_v17, %v1322_v6 }
 0x138   : > { %v719_v40 = vpop.permute.xlu1 %718  ;;  %v717_v41 = vpop.permute.xlu0 %716  ;;  %v1361_v44 = vld [vmem:[#allocation2 + $0x208] sm:$0xff]  ;;  %1661 = vmatpush1.bf16.msra.mxu0 %v1470_v20 }
 0x139   : > { %757 = vst.msk [vmem:[#allocation2 + $0x220] sm:$0xff] %vm281_vm0, %v719_v40  ;;  %v735_v45 = vsel %vm675_vm5, %v717_v41, %v719_v40  ;;  %v1472_v46 = vpack.c.bf16 %v1361_v44, %v1358_v42 }
 0x13b   : > { %2629 = vmatprep.subr.bf16.mxu1 %v1472_v46 }
 0x13c   : > { %v725_v49 = vpop.permute.xlu1 %724  ;;  %v723_v48 = vpop.permute.xlu0 %722  ;;  %2630 = vmatpush3.bf16.msra.mxu1 %v1448_v23 }
 0x13d   : > { %760 = vst.msk [vmem:[#allocation2 + $0x238] sm:$0xff] %vm281_vm0, %v725_v49  ;;  %v737_v16 = vsel %vm675_vm5, %v723_v48, %v725_v49  ;;  %v1328_v49 = vld [vmem:[#allocation2 + $0x100] sm:$0xff] }
 0x13e   : > { %v1474_v29 = vpack.c.bf16 %v737_v16, %v735_v45 }
 0x140   : > { %v721_v30 = vpop.permute.xlu1 %720  ;;  %v715_v50 = vpop.permute.xlu0 %714  ;;  %1662 = vmatprep.subr.bf16.mxu0 %v1474_v29  ;;  %v1364_v19 = vld [vmem:[#allocation2 + $0x220] sm:$0xff] }
 0x141   : > { %v736_v34 = vsel %vm675_vm5, %v721_v30, %v723_v48  ;;  %v734_v52 = vsel %vm675_vm5, %v715_v50, %v717_v41  ;;  %v1331_v48 = vld [vmem:[#allocation2 + $0x118] sm:$0xff] }
 0x142   : > { %v1473_v31 = vpack.c.bf16 %v736_v34, %v734_v52  ;;  %v1457_v52 = vpack.c.bf16 %v1331_v48, %v1328_v49  ;;  %v1394_v48 = vld [vmem:[#allocation2 + $0x310] sm:$0xff] }
 0x144   : > { %v731_v35 = vpop.permute.xlu1 %730  ;;  %v729_v56 = vpop.permute.xlu0 %728  ;;  %v1367_v58 = vld [vmem:[#allocation2 + $0x238] sm:$0xff]  ;;  %1663 = vmatpush1.bf16.msra.mxu0 %v1473_v31 }
 0x145   : > { %763 = vst.msk [vmem:[#allocation2 + $0x250] sm:$0xff] %vm281_vm0, %v731_v35  ;;  %v739_v9 = vsel %vm675_vm5, %v729_v56, %v731_v35  ;;  %v1475_v5 = vpack.c.bf16 %v1367_v58, %v1364_v19 }
 0x147   : > { %2631 = vmatprep.subr.bf16.mxu1 %v1475_v5 }
 0x148   : > { %v813_v25 = vpop.permute.xlu1 %812  ;;  %v811_v33 = vpop.permute.xlu0 %810  ;;  %2632 = vmatpush3.bf16.msra.mxu1 %v1451_v59 }
 0x149   : > { %854 = vst.msk [vmem:[#allocation2 + $0x268] sm:$0xff] %vm281_vm0, %v813_v25  ;;  %v833_v60 = vsel %vm775_vm8, %v811_v33, %v813_v25 }
 0x14a   : > { %v1477_v10 = vpack.c.bf16 %v833_v60, %v739_v9  ;;  %v1337_v60 = vld [vmem:[#allocation2 + $0x148] sm:$0xff] }
 0x14c   : > { %v809_v62 = vpop.permute.xlu1 %808  ;;  %v727_v8 = vpop.permute.xlu0 %726  ;;  %1664 = vmatprep.subr.bf16.mxu0 %v1477_v10  ;;  %v1370_v13 = vld [vmem:[#allocation2 + $0x250] sm:$0xff] }
 0x14d   : > { %v832_v0 = vsel %vm775_vm8, %v809_v62, %v811_v33  ;;  %v738_v12 = vsel %vm675_vm5, %v727_v8, %v729_v56  ;;  %v1334_v33 = vld [vmem:[#allocation2 + $0x130] sm:$0xff] }
 0x14e   : > { %v1476_v3 = vpack.c.bf16 %v832_v0, %v738_v12  ;;  %v1460_v6 = vpack.c.bf16 %v1337_v60, %v1334_v33  ;;  %v2825_v60 = vld [vmem:[%s3974_s2 + $0x60] ss:$12 sps:$4 sm:$0xff]  }
 0x150   : > { %v819_v7 = vpop.permute.xlu1 %818  ;;  %v817_v18 = vpop.permute.xlu0 %816  ;;  %v1373_v15 = vld [vmem:[#allocation2 + $0x268] sm:$0xff]  ;;  %1665 = vmatpush1.bf16.msra.mxu0 %v1476_v3 }
 0x151   : > { %857 = vst.msk [vmem:[#allocation2 + $0x280] sm:$0xff] %vm281_vm0, %v819_v7  ;;  %v835_v37 = vsel %vm775_vm8, %v817_v18, %v819_v7  ;;  %v1478_v20 = vpack.c.bf16 %v1373_v15, %v1370_v13 }
 0x153   : > { %2633 = vmatprep.subr.bf16.mxu1 %v1478_v20 }
 0x154   : > { %v825_v40 = vpop.permute.xlu1 %824  ;;  %v823_v41 = vpop.permute.xlu0 %822  ;;  %2634 = vmatpush3.bf16.msra.mxu1 %v1454_v39 }
 0x155   : > { %860 = vst.msk [vmem:[#allocation2 + $0x298] sm:$0xff] %vm281_vm0, %v825_v40  ;;  %v837_v42 = vsel %vm775_vm8, %v823_v41, %v825_v40 }
 0x156   : > { %v1480_v44 = vpack.c.bf16 %v837_v42, %v835_v37  ;;  %v2811_v42 = vld [vmem:[%s3974_s2] ss:$12 sps:$4 sm:$0xff]  }
 0x158   : > { %v821_v45 = vpop.permute.xlu1 %820  ;;  %v815_v46 = vpop.permute.xlu0 %814  ;;  %1666 = vmatprep.subr.bf16.mxu0 %v1480_v44  ;;  %v1376_v50 = vld [vmem:[#allocation2 + $0x280] sm:$0xff] }
 0x159   : > { %v836_v47 = vsel %vm775_vm8, %v821_v45, %v823_v41  ;;  %v834_v23 = vsel %vm775_vm8, %v815_v46, %v817_v18  ;;  %v1343_v41 = vld [vmem:[#allocation2 + $0x178] sm:$0xff]  ;;  %v1397_v46 = vld [vmem:[#allocation2 + $0x328] sm:$0xff] }
 0x15a   : > { %v1479_v16 = vpack.c.bf16 %v836_v47, %v834_v23  ;;  %v1340_v23 = vld [vmem:[#allocation2 + $0x160] sm:$0xff] }
 0x15b   : > { %v1463_v49 = vpack.c.bf16 %v1343_v41, %v1340_v23 }
 0x15c   : > { %v831_v29 = vpop.permute.xlu1 %830  ;;  %v829_v30 = vpop.permute.xlu0 %828  ;;  %v1379_v34 = vld [vmem:[#allocation2 + $0x298] sm:$0xff]  ;;  %1667 = vmatpush1.bf16.msra.mxu0 %v1479_v16 }
 0x15d   : > { %863 = vst.msk [vmem:[#allocation2 + $0x2b0] sm:$0xff] %vm281_vm0, %v831_v29  ;;  %v839_v31 = vsel %vm775_vm8, %v829_v30, %v831_v29  ;;  %v1481_v54 = vpack.c.bf16 %v1379_v34, %v1376_v50  ;;  %v2814_v16 = vld [vmem:[%s3974_s2 + $0x1c] ss:$12 sps:$4 sm:$0xff]   ;;  %v1490_v29 = vpack.c.bf16 %v1397_v46, %v1394_v48  ;;  %v1400_v50 = vld [vmem:[#allocation2 + $0x340] sm:$0xff] }
 0x15e   : > { %v2816_v34 = vld [vmem:[%s3974_s2 + $0x18] ss:$12 sps:$4 sm:$0xff]  }
 0x15f   : > { %2635 = vmatprep.subr.bf16.mxu1 %v1481_v54  ;;  %v1415_v54 = vld [vmem:[#allocation2 + $0x3b8] sm:$0xff] }
 0x160   : > { %v913_v35 = vpop.permute.xlu1 %912  ;;  %v911_v56 = vpop.permute.xlu0 %910  ;;  %2636 = vmatpush3.bf16.msra.mxu1 %v1457_v52  ;;  %v1409_v52 = vld [vmem:[#allocation2 + $0x388] sm:$0xff] }
 0x161   : > { %954 = vst.msk [vmem:[#allocation2 + $0x2c8] sm:$0xff] %vm281_vm0, %v913_v35  ;;  %v933_v19 = vsel %vm875_vm6, %v911_v56, %v913_v35  ;;  %v1412_v35 = vld [vmem:[#allocation2 + $0x3a0] sm:$0xff] }
 0x162   : > { %v1483_v58 = vpack.c.bf16 %v933_v19, %v839_v31  ;;  %v2817_v31 = vld [vmem:[%s3974_s2 + $0x34] ss:$12 sps:$4 sm:$0xff]   ;;  %v1421_v19 = vld [vmem:[#allocation2 + $0x3e8] sm:$0xff] }
 0x164   : > { %v909_v9 = vpop.permute.xlu1 %908  ;;  %v827_v5 = vpop.permute.xlu0 %826  ;;  %1668 = vmatprep.subr.bf16.mxu0 %v1483_v58  ;;  %v1382_v8 = vld [vmem:[#allocation2 + $0x2b0] sm:$0xff]  ;;  %v1427_v58 = vld [vmem:[#allocation2 + $0x418] sm:$0xff] }
 0x165   : > { %v932_v32 = vsel %vm875_vm6, %v909_v9, %v911_v56  ;;  %v838_v59 = vsel %vm775_vm8, %v827_v5, %v829_v30  ;;  %v1403_v30 = vld [vmem:[#allocation2 + $0x358] sm:$0xff]  ;;  %v1499_v56 = vpack.c.bf16 %v1415_v54, %v1412_v35  ;;  %v1424_v9 = vld [vmem:[#allocation2 + $0x400] sm:$0xff] }
 0x166   : > { %v1482_v25 = vpack.c.bf16 %v932_v32, %v838_v59  ;;  %v1505_v5 = vpack.c.bf16 %v1427_v58, %v1424_v9  ;;  %v1430_v32 = vld [vmem:[#allocation2 + $0x430] sm:$0xff] }
 0x167   : > { %v2823_v59 = vld [vmem:[%s3974_s2 + $0x64] ss:$12 sps:$4 sm:$0xff]  }
 0x168   : > { %v919_v10 = vpop.permute.xlu1 %918  ;;  %v917_v62 = vpop.permute.xlu0 %916  ;;  %v1385_v0 = vld [vmem:[#allocation2 + $0x2c8] sm:$0xff]  ;;  %1669 = vmatpush1.bf16.msra.mxu0 %v1482_v25 }
 0x169   : > { %957 = vst.msk [vmem:[#allocation2 + $0x2e0] sm:$0xff] %vm281_vm0, %v919_v10  ;;  %v935_v12 = vsel %vm875_vm6, %v917_v62, %v919_v10  ;;  %v1484_v3 = vpack.c.bf16 %v1385_v0, %v1382_v8  ;;  %v2832_v10 = vld [vmem:[%s3974_s2 + $0xac] ss:$12 sps:$4 sm:$0xff]   ;;  %v2835_v8 = vld [vmem:[%s3974_s2 + $0x8] ss:$12 sps:$4 sm:$0xff]  }
 0x16a   : > { %v2836_v0 = vld [vmem:[%s3974_s2 + $0x20] ss:$12 sps:$4 sm:$0xff]  }
 0x16b   : > { %2637 = vmatprep.subr.bf16.mxu1 %v1484_v3  ;;  %v2838_v3 = vld [vmem:[%s3974_s2 + $0x50] ss:$12 sps:$4 sm:$0xff]  }
 0x16c   : > { %v925_v17 = vpop.permute.xlu1 %924  ;;  %v923_v7 = vpop.permute.xlu0 %922  ;;  %2638 = vmatpush3.bf16.msra.mxu1 %v1460_v6 }
 0x16d   : > { %960 = vst.msk [vmem:[#allocation2 + $0x2f8] sm:$0xff] %vm281_vm0, %v925_v17  ;;  %v937_v18 = vsel %vm875_vm6, %v923_v7, %v925_v17 }
 0x16e   : > { %v1486_v13 = vpack.c.bf16 %v937_v18, %v935_v12  ;;  %v2837_v12 = vld [vmem:[%s3974_s2 + $0x38] ss:$12 sps:$4 sm:$0xff]  }
 0x170   : > { %v921_v15 = vpop.permute.xlu1 %920  ;;  %v915_v37 = vpop.permute.xlu0 %914  ;;  %1670 = vmatprep.subr.bf16.mxu0 %v1486_v13  ;;  %v1388_v44 = vld [vmem:[#allocation2 + $0x2e0] sm:$0xff] }
 0x171   : > { %v936_v20 = vsel %vm875_vm6, %v921_v15, %v923_v7  ;;  %v934_v39 = vsel %vm875_vm6, %v915_v37, %v917_v62  ;;  %v2834_v62 = vld [vmem:[%s3974_s2 + $0xa8] ss:$12 sps:$4 sm:$0xff]  }
 0x172   : > { %v1485_v40 = vpack.c.bf16 %v936_v20, %v934_v39 }
 0x174   : > { %v1391_v45 = vld [vmem:[#allocation2 + $0x2f8] sm:$0xff]  ;;  %1671 = vmatpush1.bf16.msra.mxu0 %v1485_v40 }
 0x175   : > { %v1487_v47 = vpack.c.bf16 %v1391_v45, %v1388_v44  ;;  %1753 = vmatprep.subr.bf16.mxu0 %v3399_v2  ;;  %v1493_v2 = vpack.c.bf16 %v1403_v30, %v1400_v50 }
 0x177   : > { %2639 = vmatprep.subr.bf16.mxu1 %v1487_v47  ;;  %1673 = vmatmul.mubr.bf16.vlgmr.msra.gmra.mrb[0].mxu0 %v2811_v42 }
 0x178   : > { %2640 = vmatpush3.bf16.msra.mxu1 %v1463_v49  ;;  %1754 = vmatpush1.bf16.msra.mxu0 %v3413_v22  ;;  %v1406_v22 = vld [vmem:[#allocation2 + $0x370] sm:$0xff] }
 0x179   : > { %2705 = vmatprep.subr.bf16.mxu1 %v1490_v29  ;;  %1755 = vmatprep.subr.bf16.mxu0 %v3442_v55  ;;  %v1496_v55 = vpack.c.bf16 %v1409_v52, %v1406_v22 }
 0x17a   : > { %1682 = vmatprep.mubr.bf16.mxu0 %v2814_v16 }
 0x17b   : > { %1899 = vmatmul.mubr.bf16.vlgmr.msra.gmra.mrb[16].mxu1 %v2811_v42 }
 0x17c   : > { %2706 = vmatpush3.bf16.msra.mxu1 %v1490_v29  ;;  %1906 = vmatprep.mubr.bf16.mxu1 %v2814_v16 }
 0x17d   : > { %2707 = vmatprep.subr.bf16.mxu1 %v1493_v2  ;;  %1756 = vmatpush1.bf16.msra.mxu0 %v3456_v63  ;;  %v2819_v63 = vld [vmem:[%s3974_s2 + $0x30] ss:$12 sps:$4 sm:$0xff]  }
 0x17e   : > { %1757 = vmatprep.subr.bf16.mxu0 %v3484_v43  ;;  %v2820_v43 = vld [vmem:[%s3974_s2 + $0x4c] ss:$12 sps:$4 sm:$0xff]  }
 0x17f   : > { %1683 = vmatmul.mubr.bf16.gmra.mrb[4].mxu0 %v2816_v34 }
 0x180   : > { %2708 = vmatpush3.bf16.msra.mxu1 %v1493_v2  ;;  %1692 = vmatprep.mubr.bf16.mxu0 %v2817_v31 }
 0x181   : > { %2709 = vmatprep.subr.bf16.mxu1 %v1496_v55  ;;  %1758 = vmatpush1.bf16.msra.mxu0 %v3498_v53  ;;  %v1418_v53 = vld [vmem:[#allocation2 + $0x3d0] sm:$0xff] }
 0x182   : > { %1759 = vmatprep.subr.bf16.mxu0 %v3513_v61  ;;  %v1502_v61 = vpack.c.bf16 %v1421_v19, %v1418_v53 }
 0x183   : > { %1907 = vmatmul.mubr.bf16.gmra.mrb[20].mxu1 %v2816_v34 }
 0x184   : > { %2710 = vmatpush3.bf16.msra.mxu1 %v1496_v55  ;;  %1914 = vmatprep.mubr.bf16.mxu1 %v2817_v31 }
 0x185   : > { %2711 = vmatprep.subr.bf16.mxu1 %v1499_v56  ;;  %1760 = vmatpush1.bf16.msra.mxu0 %v3529_v4  ;;  %v2822_v4 = vld [vmem:[%s3974_s2 + $0x48] ss:$12 sps:$4 sm:$0xff]  }
 0x186   : > { %1761 = vmatprep.subr.bf16.mxu0 %v3548_v38  ;;  %v1433_v38 = vld [vmem:[#allocation2 + $0x448] sm:$0xff] }
 0x187   : > { %1693 = vmatmul.mubr.bf16.gmra.mrb[8].mxu0 %v2819_v63  ;;  %v1508_v25 = vpack.c.bf16 %v1433_v38, %v1430_v32 }
 0x188   : > { %2712 = vmatpush3.bf16.msra.mxu1 %v1499_v56  ;;  %1702 = vmatprep.mubr.bf16.mxu0 %v2820_v43 }
 0x189   : > { %2713 = vmatprep.subr.bf16.mxu1 %v1502_v61  ;;  %1762 = vmatpush1.bf16.msra.mxu0 %v3559_v28  ;;  %v1436_v28 = vld [vmem:[#allocation2 + $0x460] sm:$0xff] }
 0x18a   : > { %1763 = vmatprep.subr.bf16.mxu0 %v3587_v51  ;;  %v1439_v51 = vld [vmem:[#allocation2 + $0x478] sm:$0xff] }
 0x18b   : > { %1915 = vmatmul.mubr.bf16.gmra.mrb[24].mxu1 %v2819_v63  ;;  %v1511_v33 = vpack.c.bf16 %v1439_v51, %v1436_v28 }
 0x18c   : > { %2714 = vmatpush3.bf16.msra.mxu1 %v1502_v61  ;;  %1922 = vmatprep.mubr.bf16.mxu1 %v2820_v43 }
 0x18d   : > { %2715 = vmatprep.subr.bf16.mxu1 %v1505_v5  ;;  %1764 = vmatpush1.bf16.msra.mxu0 %v3598_v57  ;;  %v2826_v57 = vld [vmem:[%s3974_s2 + $0x7c] ss:$12 sps:$4 sm:$0xff]  }
 0x18e   : > { %1765 = vmatprep.subr.bf16.mxu0 %v3608_v11  ;;  %v2828_v11 = vld [vmem:[%s3974_s2 + $0x78] ss:$12 sps:$4 sm:$0xff]  }
 0x18f   : > { %1703 = vmatmul.mubr.bf16.gmra.mrb[12].mxu0 %v2822_v4 }
 0x190   : > { %2716 = vmatpush3.bf16.msra.mxu1 %v1505_v5  ;;  %1712 = vmatprep.mubr.bf16.mxu0 %v2823_v59 }
 0x191   : > { %2717 = vmatprep.subr.bf16.mxu1 %v1508_v25  ;;  %1766 = vmatpush1.bf16.msra.mxu0 %v3613_v14  ;;  %v2829_v14 = vld [vmem:[%s3974_s2 + $0x94] ss:$12 sps:$4 sm:$0xff]  }
 0x192   : > { %1767 = vmatprep.subr.bf16.mxu0 %v2978_v21 }
 0x193   : > { %1923 = vmatmul.mubr.bf16.gmra.mrb[28].mxu1 %v2822_v4 }
 0x194   : > { %2718 = vmatpush3.bf16.msra.mxu1 %v1508_v25  ;;  %1930 = vmatprep.mubr.bf16.mxu1 %v2823_v59 }
 0x195   : > { %2719 = vmatprep.subr.bf16.mxu1 %v1511_v33  ;;  %1768 = vmatpush1.bf16.msra.mxu0 %v2978_v21  ;;  %v2831_v21 = vld [vmem:[%s3974_s2 + $0x90] ss:$12 sps:$4 sm:$0xff]  }
 0x197   : > { %1713 = vmatmul.mubr.bf16.gmra.mrb[16].mxu0 %v2825_v60 }
 0x198   : > { %1722 = vmatprep.mubr.bf16.mxu0 %v2826_v57  ;;  %2720 = vmatpush3.bf16.msra.mxu1 %v1511_v33 }
 0x19b   : > { %1931 = vmatmul.mubr.bf16.gmra.mrb[32].mxu1 %v2825_v60 }
 0x19c   : > { %1938 = vmatprep.mubr.bf16.mxu1 %v2826_v57 }
 0x19f   : > { %1723 = vmatmul.mubr.bf16.gmra.mrb[20].mxu0 %v2828_v11 }
 0x1a0   : > { %1732 = vmatprep.mubr.bf16.mxu0 %v2829_v14 }
 0x1a3   : > { %1939 = vmatmul.mubr.bf16.gmra.mrb[36].mxu1 %v2828_v11 }
 0x1a4   : > { %1946 = vmatprep.mubr.bf16.mxu1 %v2829_v14 }
 0x1a7   : > { %1733 = vmatmul.mubr.bf16.gmra.mrb[24].mxu0 %v2831_v21 }
 0x1a8   : > { %1742 = vmatprep.mubr.bf16.mxu0 %v2832_v10 }
 0x1ab   : > { %1947 = vmatmul.mubr.bf16.gmra.mrb[40].mxu1 %v2831_v21 }
 0x1ac   : > { %1954 = vmatprep.mubr.bf16.mxu1 %v2832_v10 }
 0x1af   : > { %1743 = vmatmul.mubr.bf16.gmra.mrb[28].mxu0 %v2834_v62 }
 0x1b0   : > { %1785 = vmatprep.mubr.bf16.mxu0 %v2977_v27 }
 0x1b3   : > { %1955 = vmatmul.mubr.bf16.gmra.mrb[44].mxu1 %v2834_v62 }
 0x1b4   : > { %2721 = vmatprep.mubr.bf16.mxu1 %v2835_v8 }
 0x1b7   : > { %1786 = vmatmul.mubr.bf16.vlgmr.msra.gmra.mrb[0].mxu0 %v2835_v8 }
 0x1b8   : > { %1795 = vmatprep.mubr.bf16.mxu0 %v2977_v27 }
 0x1bb   : > { %2722 = vmatmul.mubr.bf16.vlgmr.msra.gmra.mrb[48].mxu1 %v2836_v0 }
 0x1bc   : > { %2725 = vmatprep.mubr.bf16.mxu1 %v2837_v12 }
 0x1bf   : > { %1796 = vmatmul.mubr.bf16.gmra.mrb[4].mxu0 %v2836_v0 }
 0x1c0   : > { %1805 = vmatprep.mubr.bf16.mxu0 %v2977_v27 }
 0x1c3   : > { %2726 = vmatmul.mubr.bf16.gmra.mrb[52].mxu1 %v2838_v3 }
 0x1c4   : > { %2729 = vmatprep.mubr.bf16.mxu1 %v3622_v36 }
 0x1c7   : > { %1806 = vmatmul.mubr.bf16.gmra.mrb[8].mxu0 %v2837_v12 }
 0x1c8   : > { %1815 = vmatprep.mubr.bf16.mxu0 %v2977_v27 }
 0x1cb   : > { %2730 = vmatmul.mubr.bf16.gmra.mrb[56].mxu1 %v3634_v26 }
 0x1cc   : > { %2733 = vmatprep.mubr.bf16.mxu1 %v3645_v24 }
 0x1cf   : > { %1816 = vmatmul.mubr.bf16.gmra.mrb[12].mxu0 %v2838_v3 }
 0x1d3   : > { %2734 = vmatmul.mubr.bf16.gmra.mrb[60].mxu1 %v3656_v1 }
 0x1ee   : > { %v1827_v6 = vpop.f32.mrb[0].mxu1 }
 0x1ef   : > { %v1829_v17 = vpop.f32.mrb[1].mxu1 }
 0x1f0   : > { %v1831_v7 = vpop.f32.mrb[2].mxu1 }
 0x1f1   : > { %v1833_v18 = vpop.f32.mrb[3].mxu1 }
 0x1f6   : > { %v1837_v13 = vpop.f32.mrb[4].mxu1 }
 0x1f7   : > { %v1839_v15 = vpop.f32.mrb[5].mxu1 }
 0x1f8   : > { %v1841_v37 = vpop.f32.mrb[6].mxu1 }
 0x1f9   : > { %v1843_v20 = vpop.f32.mrb[7].mxu1 }
 0x1fe   : > { %v1847_v39 = vpop.f32.mrb[8].mxu1 }
 0x1ff   : > { %v1849_v36 = vpop.f32.mrb[9].mxu1 }
 0x200   : > { %v3775_v40 = vpop.f32.mrb[10].mxu1 }
 0x201   : > { %v3777_v27 = vpop.f32.mrb[11].mxu1 }
 0x206   : > { %v3779_v26 = vpop.f32.mrb[12].mxu1 }
 0x207   : > { %v3781_v24 = vpop.f32.mrb[13].mxu1 }
 0x208   : > { %v3783_v41 = vpop.f32.mrb[14].mxu1 }
 0x209   : > { %v3785_v1 = vpop.f32.mrb[15].mxu1 }
 0x24e   : > { %v2641_v42 = vpop.f32.mrb[16].mxu1 }
 0x24f   : > { %v2642_v44 = vpop.f32.mrb[17].mxu1 }
 0x250   : > { %v3787_v45 = vadd.f32 %v2642_v44, %v2641_v42  ;;  %v2644_v46 = vpop.f32.mrb[18].mxu1 }
 0x251   : > { %v2645_v47 = vpop.f32.mrb[19].mxu1 }
 0x252   : > { %v3789_v23 = vadd.f32 %v2645_v47, %v2644_v46 }
 0x256   : > { %v2647_v49 = vpop.f32.mrb[20].mxu1 }
 0x257   : > { %v2648_v48 = vpop.f32.mrb[21].mxu1 }
 0x258   : > { %v3791_v16 = vadd.f32 %v2648_v48, %v2647_v49  ;;  %v2650_v29 = vpop.f32.mrb[22].mxu1 }
 0x259   : > { %v2651_v30 = vpop.f32.mrb[23].mxu1 }
 0x25a   : > { %v3793_v50 = vadd.f32 %v2651_v30, %v2650_v29 }
 0x25e   : > { %v2653_v2 = vpop.f32.mrb[24].mxu1 }
 0x25f   : > { %v2654_v34 = vpop.f32.mrb[25].mxu1 }
 0x260   : > { %v3795_v52 = vadd.f32 %v2654_v34, %v2653_v2  ;;  %v2656_v31 = vpop.f32.mrb[26].mxu1 }
 0x261   : > { %v2657_v22 = vpop.f32.mrb[27].mxu1 }
 0x262   : > { %v3797_v55 = vadd.f32 %v2657_v22, %v2656_v31 }
 0x266   : > { %v2659_v54 = vpop.f32.mrb[28].mxu1 }
 0x267   : > { %v2660_v35 = vpop.f32.mrb[29].mxu1 }
 0x268   : > { %v3799_v56 = vadd.f32 %v2660_v35, %v2659_v54  ;;  %v2662_v63 = vpop.f32.mrb[30].mxu1 }
 0x269   : > { %v2663_v19 = vpop.f32.mrb[31].mxu1 }
 0x26a   : > { %v3801_v43 = vadd.f32 %v2663_v19, %v2662_v63  ;;  %v1714_v53 = vpop.f32.mrb[16].mxu0 }
 0x26b   : > { %v1828_v61 = vadd.f32 %v1827_v6, %v1714_v53  ;;  %v1716_v58 = vpop.f32.mrb[17].mxu0 }
 0x26c   : > { %v1830_v9 = vadd.f32 %v1829_v17, %v1716_v58  ;;  %v1718_v5 = vpop.f32.mrb[18].mxu0 }
 0x26d   : > { %v1832_v4 = vadd.f32 %v1831_v7, %v1718_v5  ;;  %v1720_v32 = vpop.f32.mrb[19].mxu0  ;;  %v2117_v48 = vmul.f32 0.5, %v1828_v61 }
 0x26e   : > { %v2665_v38 = vpop.f32.mrb[32].mxu1  ;;  %v1834_v59 = vadd.f32 %v1833_v18, %v1720_v32 }
 0x26f   : > { %v2666_v28 = vpop.f32.mrb[33].mxu1  ;;  %v2120_v2 = vmul.f32 0.5, %v1832_v4  ;;  %2839 = vtanh.f32 %v2117_v48 }
 0x270   : > { %v3803_v51 = vadd.f32 %v2666_v28, %v2665_v38  ;;  %v2668_v25 = vpop.f32.mrb[34].mxu1  ;;  %v2121_v22 = vmul.f32 0.5, %v1834_v59 }
 0x271   : > { %v2669_v33 = vpop.f32.mrb[35].mxu1 }
 0x272   : > { %v3805_v60 = vadd.f32 %v2669_v33, %v2668_v25  ;;  %v1724_v57 = vpop.f32.mrb[20].mxu0 }
 0x273   : > { %v1838_v11 = vadd.f32 %v1837_v13, %v1724_v57  ;;  %v1726_v14 = vpop.f32.mrb[21].mxu0 }
 0x274   : > { %v1840_v21 = vadd.f32 %v1839_v15, %v1726_v14  ;;  %v1728_v10 = vpop.f32.mrb[22].mxu0 }
 0x275   : > { %v1842_v62 = vadd.f32 %v1841_v37, %v1728_v10  ;;  %v1730_v8 = vpop.f32.mrb[23].mxu0 }
 0x276   : > { %v2671_v0 = vpop.f32.mrb[36].mxu1  ;;  %v1844_v12 = vadd.f32 %v1843_v20, %v1730_v8  ;;  %v2118_v20 = vmul.f32 0.5, %v1830_v9 }
 0x277   : > { %v2672_v3 = vpop.f32.mrb[37].mxu1 }
 0x278   : > { %v3807_v6 = vadd.f32 %v2672_v3, %v2671_v0  ;;  %v2674_v17 = vpop.f32.mrb[38].mxu1  ;;  %2841 = vtanh.f32 %v2118_v20  ;;  %v2127_v58 = vmul.f32 0.5, %v1844_v12 }
 0x279   : > { %v2675_v7 = vpop.f32.mrb[39].mxu1  ;;  %2843 = vtanh.f32 %v2120_v2  ;;  %v3825_v57 = vpop.eup %2839 }
 0x27a   : > { %v3809_v18 = vadd.f32 %v2675_v7, %v2674_v17  ;;  %v1734_v42 = vpop.f32.mrb[24].mxu0  ;;  %2845 = vtanh.f32 %v2121_v22 }
 0x27b   : > { %v1848_v44 = vadd.f32 %v1847_v39, %v1734_v42  ;;  %v1736_v46 = vpop.f32.mrb[25].mxu0  ;;  %v2123_v39 = vmul.f32 0.5, %v1838_v11 }
 0x27c   : > { %v1850_v47 = vadd.f32 %v1849_v36, %v1736_v46  ;;  %v1738_v49 = vpop.f32.mrb[26].mxu0 }
 0x27d   : > { %v1852_v13 = vadd.f32 %v3775_v40, %v1738_v49  ;;  %v1740_v15 = vpop.f32.mrb[27].mxu0  ;;  %v2124_v40 = vmul.f32 0.5, %v1840_v21  ;;  %2847 = vtanh.f32 %v2123_v39 }
 0x27e   : > { %v2677_v37 = vpop.f32.mrb[40].mxu1  ;;  %v1854_v29 = vadd.f32 %v3777_v27, %v1740_v15  ;;  %v2126_v27 = vmul.f32 0.5, %v1842_v62 }
 0x27f   : > { %v2678_v30 = vpop.f32.mrb[41].mxu1  ;;  %2849 = vtanh.f32 %v2124_v40 }
 0x280   : > { %v3813_v34 = vadd.f32 %v2678_v30, %v2677_v37  ;;  %v2680_v31 = vpop.f32.mrb[42].mxu1  ;;  %2851 = vtanh.f32 %v2126_v27 }
 0x281   : > { %v2681_v54 = vpop.f32.mrb[43].mxu1  ;;  %2853 = vtanh.f32 %v2127_v58 }
 0x282   : > { %v3815_v35 = vadd.f32 %v2681_v54, %v2680_v31  ;;  %v1744_v36 = vpop.f32.mrb[28].mxu0  ;;  %2855 = vtanh.f32 %v1848_v44  ;;  %v3827_v14 = vpop.eup %2841 }
 0x283   : > { %v1858_v63 = vadd.f32 %v3779_v26, %v1744_v36  ;;  %v1746_v19 = vpop.f32.mrb[29].mxu0  ;;  %2857 = vtanh.f32 %v1850_v47  ;;  %v3829_v62 = vpop.eup %2843 }
 0x284   : > { %v1860_v53 = vadd.f32 %v3781_v24, %v1746_v19  ;;  %v1748_v61 = vpop.f32.mrb[30].mxu0  ;;  %2859 = vtanh.f32 %v1852_v13  ;;  %v3831_v12 = vpop.eup %2845 }
 0x285   : > { %v1862_v9 = vadd.f32 %v3783_v41, %v1748_v61  ;;  %v1750_v5 = vpop.f32.mrb[31].mxu0 }
 0x286   : > { %v2683_v4 = vpop.f32.mrb[44].mxu1  ;;  %v1864_v32 = vadd.f32 %v3785_v1, %v1750_v5 }
 0x287   : > { %v2684_v38 = vpop.f32.mrb[45].mxu1  ;;  %v3834_v7 = vpop.eup %2847 }
 0x288   : > { %v3821_v59 = vadd.f32 %v2684_v38, %v2683_v4  ;;  %v2686_v26 = vpop.f32.mrb[46].mxu1 }
 0x289   : > { %v2687_v28 = vpop.f32.mrb[47].mxu1  ;;  %v3837_v46 = vpop.eup %2849 }
 0x28a   : > { %v3823_v24 = vadd.f32 %v2687_v28, %v2686_v26  ;;  %v1787_v25 = vpop.f32.mrb[0].mxu0  ;;  %v3840_v13 = vpop.eup %2851 }
 0x28b   : > { %v2093_v33 = vmul.f32 0.5, %v1787_v25  ;;  %v1789_v41 = vpop.f32.mrb[1].mxu0  ;;  %v3843_v37 = vpop.eup %2853 }
 0x28c   : > { %v2094_v11 = vmul.f32 0.5, %v1789_v41  ;;  %v1791_v1 = vpop.f32.mrb[2].mxu0  ;;  %v2856_v30 = vpop.eup %2855 }
 0x28d   : > { %2861 = vtanh.f32 %v2093_v33  ;;  %v2096_v21 = vmul.f32 0.5, %v1791_v1  ;;  %v1793_v10 = vpop.f32.mrb[3].mxu0 }
 0x28e   : > { %v2723_v8 = vpop.f32.mrb[48].mxu1  ;;  %2863 = vtanh.f32 %v2094_v11  ;;  %v2097_v0 = vmul.f32 0.5, %v1793_v10 }
 0x28f   : > { %v2006_v3 = vadd.f32 %v2723_v8, %v3791_v16  ;;  %v1997_v17 = vpop.f32.mrb[49].mxu1  ;;  %2865 = vtanh.f32 %v2096_v21 }
 0x290   : > { %v1998_v42 = vadd.f32 %v3787_v45, %v1997_v17  ;;  %v2724_v44 = vpop.f32.mrb[50].mxu1  ;;  %2867 = vtanh.f32 %v2097_v0 }
 0x291   : > { %2869 = vtanh.f32 %v1854_v29  ;;  %v2009_v47 = vadd.f32 %v2724_v44, %v3793_v50  ;;  %v2000_v49 = vpop.f32.mrb[51].mxu1  ;;  %v2101_v15 = vmul.f32 0.5, %v2006_v3  ;;  %v2858_v29 = vpop.eup %2857 }
 0x292   : > { %2871 = vtanh.f32 %v1858_v63  ;;  %v2001_v16 = vadd.f32 %v3789_v23, %v2000_v49  ;;  %v1797_v48 = vpop.f32.mrb[4].mxu0  ;;  %v2860_v54 = vpop.eup %2859  ;;  %v2095_v40 = vmul.f32 0.5, %v1998_v42 }
 0x293   : > { %2873 = vtanh.f32 %v1860_v53  ;;  %v2099_v20 = vmul.f32 0.5, %v1797_v48  ;;  %v1799_v45 = vpop.f32.mrb[5].mxu0  ;;  %v2104_v27 = vmul.f32 0.5, %v2009_v47 }
 0x294   : > { %2875 = vtanh.f32 %v1862_v9  ;;  %v2100_v2 = vmul.f32 0.5, %v1799_v45  ;;  %v1801_v31 = vpop.f32.mrb[6].mxu0  ;;  %v2098_v0 = vmul.f32 0.5, %v2001_v16 }
 0x295   : > { %2877 = vtanh.f32 %v1864_v32  ;;  %v2102_v50 = vmul.f32 0.5, %v1801_v31  ;;  %v1803_v22 = vpop.f32.mrb[7].mxu0 }
 0x296   : > { %2879 = vtanh.f32 %v2101_v15  ;;  %v2727_v39 = vpop.f32.mrb[52].mxu1  ;;  %v2103_v21 = vmul.f32 0.5, %v1803_v22 }
 0x297   : > { %v2862_v36 = vpop.eup %2861  ;;  %v2022_v23 = vadd.f32 %v2727_v39, %v3799_v56  ;;  %v2013_v63 = vpop.f32.mrb[53].mxu1  ;;  %2881 = vtanh.f32 %v2099_v20 }
 0x298   : > { %v2864_v19 = vpop.eup %2863  ;;  %v2237_v53 = vmul.f32 0.5, %v2862_v36  ;;  %v2014_v61 = vadd.f32 %v3795_v52, %v2013_v63  ;;  %v2728_v58 = vpop.f32.mrb[54].mxu1  ;;  %2883 = vtanh.f32 %v2100_v2 }
 0x299   : > { %v2866_v9 = vpop.eup %2865  ;;  %v2238_v5 = vmul.f32 0.5, %v2864_v19  ;;  %v2113_v4 = vmul.f32 0.5, %v2022_v23  ;;  %v2025_v32 = vadd.f32 %v2728_v58, %v3801_v43  ;;  %v2016_v38 = vpop.f32.mrb[55].mxu1  ;;  %2885 = vtanh.f32 %v2102_v50 }
 0x29a   : > { %v2868_v26 = vpop.eup %2867  ;;  %v2285_v28 = vadd.f32 0.5, %v2237_v53  ;;  %v2240_v25 = vmul.f32 0.5, %v2866_v9  ;;  %v2107_v56 = vmul.f32 0.5, %v2014_v61  ;;  %v2017_v33 = vadd.f32 %v3797_v55, %v2016_v38  ;;  %v1807_v41 = vpop.f32.mrb[8].mxu0 }
 0x29b   : > { %v2870_v11 = vpop.eup %2869  ;;  %2887 = vtanh.f32 %v2095_v40  ;;  %v2286_v1 = vadd.f32 0.5, %v2238_v5  ;;  %v2241_v52 = vmul.f32 0.5, %v2868_v26  ;;  %v1809_v10 = vpop.f32.mrb[9].mxu0  ;;  %v2105_v55 = vmul.f32 0.5, %v1807_v41 }
 0x29c   : > { %v2872_v8 = vpop.eup %2871  ;;  %2889 = vtanh.f32 %v2104_v27  ;;  %v3849_v3 = vmul.f32 %v2856_v30, %v2285_v28  ;;  %v2288_v43 = vadd.f32 0.5, %v2240_v25  ;;  %v1811_v17 = vpop.f32.mrb[10].mxu0  ;;  %v2116_v20 = vmul.f32 0.5, %v2025_v32 }
 0x29d   : > { %v2874_v42 = vpop.eup %2873  ;;  %v3851_v44 = vmul.f32 %v2858_v29, %v2286_v1  ;;  %v2289_v47 = vadd.f32 0.5, %v2241_v52  ;;  %2891 = vtanh.f32 %v2113_v4  ;;  %v1813_v49 = vpop.f32.mrb[11].mxu0  ;;  %v2110_v30 = vmul.f32 0.5, %v2017_v33 }
 0x29e   : > { %v2876_v15 = vpop.eup %2875  ;;  %v3853_v48 = vmul.f32 %v2860_v54, %v2288_v43  ;;  %2893 = vtanh.f32 %v2107_v56  ;;  %v2731_v45 = vpop.f32.mrb[56].mxu1  ;;  %v2106_v9 = vmul.f32 0.5, %v1809_v10  ;;  %v2108_v28 = vmul.f32 0.5, %v1811_v17 }
 0x29f   : > { %v3855_v2 = vpop.eup %2877  ;;  %v3857_v16 = vmul.f32 %v2870_v11, %v2289_v47  ;;  %2895 = vtanh.f32 %v2103_v21  ;;  %v2038_v31 = vadd.f32 %v2731_v45, %v3807_v6  ;;  %v2029_v29 = vpop.f32.mrb[57].mxu1  ;;  %v2109_v25 = vmul.f32 0.5, %v1813_v49 }
 0x2a0   : > { %v2880_v50 = vpop.eup %2879  ;;  %v2030_v22 = vadd.f32 %v3803_v51, %v2029_v29  ;;  %v2732_v39 = vpop.f32.mrb[58].mxu1  ;;  %2897 = vtanh.f32 %v2105_v55  ;;  %v2381_v29 = vld [vmem:[%s3877_s16] sm:$0xff] }
 0x2a1   : > { %v2882_v36 = vpop.eup %2881  ;;  %2899 = vtanh.f32 %v2098_v0  ;;  %v2125_v54 = vmul.f32 0.5, %v2038_v31  ;;  %v2041_v40 = vadd.f32 %v2732_v39, %v3809_v18  ;;  %v2032_v23 = vpop.f32.mrb[59].mxu1  ;;  %v2245_v45 = vmul.f32 0.5, %v2880_v50 }
 0x2a2   : > { %v2884_v63 = vpop.eup %2883  ;;  %2901 = vtanh.f32 %v2116_v20  ;;  %v2243_v19 = vmul.f32 0.5, %v2882_v36  ;;  %v2119_v27 = vmul.f32 0.5, %v2030_v22  ;;  %v3863_v53 = vadd.f32 %v3805_v60, %v2032_v23  ;;  %v1817_v6 = vpop.f32.mrb[12].mxu0 }
 0x2a3   : > { %v2886_v61 = vpop.eup %2885  ;;  %2903 = vtanh.f32 %v2110_v30  ;;  %v2244_v58 = vmul.f32 0.5, %v2884_v63  ;;  %v2128_v51 = vmul.f32 0.5, %v2041_v40  ;;  %v1819_v5 = vpop.f32.mrb[13].mxu0  ;;  %v2111_v50 = vmul.f32 0.5, %v1817_v6 }
 0x2a4   : > { %v2291_v4 = vadd.f32 0.5, %v2243_v19  ;;  %v2246_v32 = vmul.f32 0.5, %v2886_v61  ;;  %2905 = vtanh.f32 %v2125_v54  ;;  %v1821_v38 = vpop.f32.mrb[14].mxu0  ;;  %v2112_v40 = vmul.f32 0.5, %v1819_v5 }
 0x2a5   : > { %v2888_v18 = vpop.eup %2887  ;;  %v2292_v26 = vadd.f32 0.5, %v2244_v58  ;;  %2907 = vtanh.f32 %v2119_v27  ;;  %v1823_v56 = vpop.f32.mrb[15].mxu0  ;;  %v2114_v27 = vmul.f32 0.5, %v1821_v38 }
 0x2a6   : > { %v2890_v33 = vpop.eup %2889  ;;  %v3865_v60 = vmul.f32 %v2872_v8, %v2291_v4  ;;  %v2294_v41 = vadd.f32 0.5, %v2246_v32  ;;  %2909 = vtanh.f32 %v2128_v51  ;;  %v2735_v11 = vpop.f32.mrb[60].mxu1  ;;  %v2239_v63 = vmul.f32 0.5, %v2888_v18  ;;  %v2389_v4 = vld [vmem:[%s3877_s16 + $0x40] sm:$0xff] }
 0x2a7   : > { %v2892_v1 = vpop.eup %2891  ;;  %v3867_v52 = vmul.f32 %v2874_v42, %v2292_v26  ;;  %2911 = vtanh.f32 %v2106_v9  ;;  %v2054_v21 = vadd.f32 %v2735_v11, %v3821_v59  ;;  %v2045_v10 = vpop.f32.mrb[61].mxu1  ;;  %v2248_v51 = vmul.f32 0.5, %v2890_v33 }
 0x2a8   : > { %v2894_v0 = vpop.eup %2893  ;;  %v3870_v43 = vmul.f32 %v2876_v15, %v2294_v41  ;;  %2913 = vtanh.f32 %v2108_v28  ;;  %v2736_v17 = vpop.f32.mrb[62].mxu1  ;;  %v2046_v8 = vadd.f32 %v3813_v34, %v2045_v10  ;;  %v2257_v30 = vmul.f32 0.5, %v2892_v1  ;;  %v2383_v28 = vld [vmem:[%s3877_s16 + $0x10] sm:$0xff]  ;;  %v2382_v1 = vld [vmem:[%s3877_s16 + $0x8] sm:$0xff] }
 0x2a9   : > { %v2896_v47 = vpop.eup %2895  ;;  %2915 = vtanh.f32 %v2109_v25  ;;  %v2048_v55 = vpop.f32.mrb[63].mxu1  ;;  %v2057_v34 = vadd.f32 %v2736_v17, %v3823_v24  ;;  %v2251_v36 = vmul.f32 0.5, %v2894_v0  ;;  %v3890_v24 = vmul.f32 0.5, %v3825_v57  ;;  %v2384_v17 = vld [vmem:[%s3877_s16 + $0x18] sm:$0xff] }
 0x2aa   : > { %v2898_v49 = vpop.eup %2897  ;;  %v2247_v20 = vmul.f32 0.5, %v2896_v47  ;;  %2917 = vtanh.f32 %v2054_v21  ;;  %v2049_v22 = vadd.f32 %v3815_v35, %v2048_v55  ;;  %v2293_v35 = vadd.f32 0.5, %v2245_v45 }
 0x2ab   : > { %v2900_v42 = vpop.eup %2899  ;;  %v2249_v59 = vmul.f32 0.5, %v2898_v49  ;;  %2919 = vtanh.f32 %v2046_v8  ;;  %v2305_v9 = vadd.f32 0.5, %v2257_v30  ;;  %v2299_v57 = vadd.f32 0.5, %v2251_v36 }
 0x2ac   : > { %v2902_v15 = vpop.eup %2901  ;;  %v2295_v31 = vadd.f32 0.5, %v2247_v20  ;;  %2921 = vtanh.f32 %v2057_v34  ;;  %v2287_v26 = vadd.f32 0.5, %v2239_v63  ;;  %v2242_v11 = vmul.f32 0.5, %v2900_v42  ;;  %v2385_v42 = vld [vmem:[%s3877_s16 + $0x20] sm:$0xff]  ;;  %v2386_v34 = vld [vmem:[%s3877_s16 + $0x28] sm:$0xff] }
 0x2ad   : > { %v2904_v39 = vpop.eup %2903  ;;  %v2297_v54 = vadd.f32 0.5, %v2249_v59  ;;  %2923 = vtanh.f32 %v2049_v22  ;;  %v2260_v32 = vmul.f32 0.5, %v2902_v15  ;;  %v2395_v55 = vmul.f32 %v2383_v28, %v2299_v57  ;;  %v2392_v59 = vld [vmem:[%s3877_s16 + $0x58] sm:$0xff] }
 0x2ae   : > { %v3882_v23 = vpop.eup %2905  ;;  %v3885_v19 = vmul.f32 %v3855_v2, %v2295_v31  ;;  %2925 = vtanh.f32 %v2111_v50  ;;  %v2115_v2 = vmul.f32 0.5, %v1823_v56  ;;  %v2254_v25 = vmul.f32 0.5, %v2904_v39 }
 0x2af   : > { %v3887_v61 = vpop.eup %2907  ;;  %v2393_v58 = vmul.f32 %v2381_v29, %v2297_v54  ;;  %2927 = vtanh.f32 %v2112_v40  ;;  %v2122_v56 = vmul.f32 0.5, %v3863_v53  ;;  %v2308_v49 = vadd.f32 0.5, %v2260_v32 }
 0x2b0   : > { %v3892_v6 = vpop.eup %2909  ;;  %2929 = vtanh.f32 %v2114_v27  ;;  %v2302_v53 = vadd.f32 0.5, %v2254_v25  ;;  %v2296_v29 = vadd.f32 0.5, %v2248_v51  ;;  %v2290_v54 = vadd.f32 0.5, %v2242_v11 }
 0x2b1   : > { %v2912_v5 = vpop.eup %2911  ;;  %v2417_v38 = vadd.f32 %v3849_v3, %v2393_v58  ;;  %v2401_v3 = vmul.f32 %v2389_v4, %v2305_v9  ;;  %v2262_v25 = vmul.f32 0.5, %v3827_v14 }
 0x2b2   : > { %v2914_v18 = vpop.eup %2913  ;;  %v2250_v33 = vmul.f32 0.5, %v2912_v5 }
 0x2b3   : > { %v2916_v41 = vpop.eup %2915  ;;  %2931 = vtanh.f32 %v2417_v38  ;;  %2453 = vst [vmem:[%s3898_s20] sm:$0xff] %v2417_v38  ;;  %v2252_v21 = vmul.f32 0.5, %v2914_v18  ;;  %v2309_v38 = vadd.f32 0.5, %v3890_v24 }
 0x2b4   : > { %v2918_v10 = vpop.eup %2917  ;;  %v2298_v0 = vadd.f32 0.5, %v2250_v33  ;;  %v2253_v47 = vmul.f32 0.5, %v2916_v41  ;;  %2933 = vtanh.f32 %v2115_v2  ;;  %v2398_v2 = vmul.f32 %v2386_v34, %v2302_v53  ;;  %v2388_v33 = vld [vmem:[%s3877_s16 + $0x38] sm:$0xff] }
 0x2b5   : > { %v2920_v8 = vpop.eup %2919  ;;  %v2300_v20 = vadd.f32 0.5, %v2252_v21  ;;  %v2413_v45 = vmul.f32 %v2918_v10, %v2293_v35  ;;  %2935 = vtanh.f32 %v2122_v56  ;;  %v2404_v35 = vmul.f32 %v2392_v59, %v2308_v49  ;;  %v2390_v21 = vld [vmem:[%s3877_s16 + $0x48] sm:$0xff] }
 0x2b6   : > { %v2394_v15 = vmul.f32 %v2382_v1, %v2298_v0  ;;  %v2301_v30 = vadd.f32 0.5, %v2253_v47  ;;  %v2407_v31 = vmul.f32 %v2920_v8, %v2287_v26  ;;  %v2922_v36 = vpop.eup %2921  ;;  %v2387_v26 = vld [vmem:[%s3877_s16 + $0x30] sm:$0xff]  ;;  %v2269_v56 = vmul.f32 0.5, %v3882_v23 }
 0x2b7   : > { %v2396_v22 = vmul.f32 %v2384_v17, %v2300_v20  ;;  %v2425_v39 = vadd.f32 %v2413_v45, %v2401_v3  ;;  %v2924_v27 = vpop.eup %2923  ;;  %v2416_v51 = vmul.f32 %v2922_v36, %v2296_v29  ;;  %v2264_v17 = vmul.f32 0.5, %v3829_v62  ;;  %v2391_v8 = vld [vmem:[%s3877_s16 + $0x50] sm:$0xff] }
 0x2b8   : > { %v2418_v50 = vadd.f32 %v3851_v44, %v2394_v15  ;;  %v2397_v40 = vmul.f32 %v2385_v42, %v2301_v30  ;;  %v2419_v63 = vadd.f32 %v2407_v31, %v2395_v55  ;;  %v2926_v9 = vpop.eup %2925  ;;  %v2410_v44 = vmul.f32 %v2924_v27, %v2290_v54 }
 0x2b9   : > { %v2420_v58 = vadd.f32 %v3853_v48, %v2396_v22  ;;  %2937 = vtanh.f32 %v2425_v39  ;;  %2461 = vst.msk [vmem:[%s3898_s20 + $0x40] sm:$0xff] %vm281_vm0, %v2425_v39  ;;  %v2928_v4 = vpop.eup %2927  ;;  %v2428_v48 = vadd.f32 %v2416_v51, %v2404_v35  ;;  %v2255_v57 = vmul.f32 0.5, %v2926_v9 }
 0x2ba   : > { %2939 = vtanh.f32 %v2418_v50  ;;  %2454 = vst [vmem:[%s3898_s20 + $0x8] sm:$0xff] %v2418_v50  ;;  %v2421_v5 = vadd.f32 %v3857_v16, %v2397_v40  ;;  %2455 = vst.msk [vmem:[%s3898_s20 + $0x10] sm:$0xff] %vm281_vm0, %v2419_v63  ;;  %v2930_v32 = vpop.eup %2929  ;;  %v2422_v18 = vadd.f32 %v2410_v44, %v2398_v2  ;;  %v2256_v16 = vmul.f32 0.5, %v2928_v4 }
 0x2bb   : > { %2941 = vtanh.f32 %v2420_v58  ;;  %2456 = vst [vmem:[%s3898_s20 + $0x18] sm:$0xff] %v2420_v58  ;;  %2464 = vst.msk [vmem:[%s3898_s20 + $0x58] sm:$0xff] %vm281_vm0, %v2428_v48  ;;  %v2303_v24 = vadd.f32 0.5, %v2255_v57  ;;  %v2258_v41 = vmul.f32 0.5, %v2930_v32  ;;  %v2265_v49 = vmul.f32 0.5, %v3831_v12 }
 0x2bc   : > { %2943 = vtanh.f32 %v2421_v5  ;;  %2457 = vst [vmem:[%s3898_s20 + $0x20] sm:$0xff] %v2421_v5  ;;  %2458 = vst.msk [vmem:[%s3898_s20 + $0x28] sm:$0xff] %vm281_vm0, %v2422_v18  ;;  %v2304_v14 = vadd.f32 0.5, %v2256_v16  ;;  %v2310_v45 = vadd.f32 0.5, %v2262_v25  ;;  %v2317_v59 = vadd.f32 0.5, %v2269_v56 }
 0x2bd   : > { %v2932_v28 = vpop.eup %2931  ;;  %2945 = vtanh.f32 %v2419_v63  ;;  %v2399_v10 = vmul.f32 %v2387_v26, %v2303_v24  ;;  %v2306_v3 = vadd.f32 0.5, %v2258_v41  ;;  %v2263_v53 = vmul.f32 0.5, %v3887_v61 }
 0x2be   : > { %v2934_v11 = vpop.eup %2933  ;;  %v2441_v1 = vmul.f32 %v2932_v28, %v2309_v38  ;;  %2947 = vtanh.f32 %v2428_v48  ;;  %v2400_v47 = vmul.f32 %v2388_v33, %v2304_v14  ;;  %v2272_v62 = vmul.f32 0.5, %v3892_v6 }
 0x2bf   : > { %2949 = vtanh.f32 %v2422_v18  ;;  %v2259_v0 = vmul.f32 0.5, %v2934_v11  ;;  %v2936_v55 = vpop.eup %2935  ;;  %v2423_v23 = vadd.f32 %v3865_v60, %v2399_v10  ;;  %v2402_v20 = vmul.f32 %v2390_v21, %v2306_v3 }
 0x2c0   : > { %2465 = vst [vmem:[%s3927_s23] sm:$0xff] %v2441_v1  ;;  %v2424_v15 = vadd.f32 %v3867_v52, %v2400_v47  ;;  %v2312_v29 = vadd.f32 0.5, %v2264_v17  ;;  %v2266_v34 = vmul.f32 0.5, %v2936_v55  ;;  %v2313_v52 = vadd.f32 0.5, %v2265_v49 }
 0x2c1   : > { %v2307_v42 = vadd.f32 0.5, %v2259_v0  ;;  %2951 = vtanh.f32 %v2423_v23  ;;  %2459 = vst [vmem:[%s3898_s20 + $0x30] sm:$0xff] %v2423_v23  ;;  %v2426_v31 = vadd.f32 %v3870_v43, %v2402_v20  ;;  %v2311_v43 = vadd.f32 0.5, %v2263_v53 }
 0x2c2   : > { %2953 = vtanh.f32 %v2424_v15  ;;  %2460 = vst [vmem:[%s3898_s20 + $0x38] sm:$0xff] %v2424_v15  ;;  %v2320_v40 = vadd.f32 0.5, %v2272_v62  ;;  %v2267_v35 = vmul.f32 0.5, %v3834_v7  ;;  %v2314_v58 = vadd.f32 0.5, %v2266_v34 }
 0x2c3   : > { %v2938_v30 = vpop.eup %2937  ;;  %v2403_v12 = vmul.f32 %v2391_v8, %v2307_v42  ;;  %2955 = vtanh.f32 %v2426_v31  ;;  %2462 = vst [vmem:[%s3898_s20 + $0x48] sm:$0xff] %v2426_v31  ;;  %v2268_v9 = vmul.f32 0.5, %v3837_v46  ;;  %v2270_v5 = vmul.f32 0.5, %v3840_v13 }
 0x2c4   : > { %v2940_v60 = vpop.eup %2939  ;;  %v2449_v22 = vmul.f32 %v2938_v30, %v2317_v59  ;;  %v2315_v4 = vadd.f32 0.5, %v2267_v35  ;;  %v2271_v7 = vmul.f32 0.5, %v3843_v37 }
 0x2c5   : > { %v2942_v61 = vpop.eup %2941  ;;  %v2442_v39 = vmul.f32 %v2940_v60, %v2310_v45  ;;  %v2427_v6 = vadd.f32 %v3885_v19, %v2403_v12  ;;  %v2316_v46 = vadd.f32 0.5, %v2268_v9  ;;  %v2318_v32 = vadd.f32 0.5, %v2270_v5 }
 0x2c6   : > { %v2944_v36 = vpop.eup %2943  ;;  %v2444_v54 = vmul.f32 %v2942_v61, %v2312_v29  ;;  %2473 = vst.msk [vmem:[%s3927_s23 + $0x40] sm:$0xff] %vm281_vm0, %v2449_v22  ;;  %v2319_v26 = vadd.f32 0.5, %v2271_v7 }
 0x2c7   : > { %v2946_v50 = vpop.eup %2945  ;;  %2466 = vst [vmem:[%s3927_s23 + $0x8] sm:$0xff] %v2442_v39  ;;  %v2445_v63 = vmul.f32 %v2944_v36, %v2313_v52  ;;  %2957 = vtanh.f32 %v2427_v6  ;;  %2463 = vst [vmem:[%s3898_s20 + $0x50] sm:$0xff] %v2427_v6 }
 0x2c8   : > { %v2948_v27 = vpop.eup %2947  ;;  %2468 = vst [vmem:[%s3927_s23 + $0x18] sm:$0xff] %v2444_v54  ;;  %v2443_v19 = vmul.f32 %v2946_v50, %v2311_v43 }
 0x2c9   : > { %v2950_v51 = vpop.eup %2949  ;;  %2469 = vst [vmem:[%s3927_s23 + $0x20] sm:$0xff] %v2445_v63  ;;  %v2452_v2 = vmul.f32 %v2948_v27, %v2320_v40 }
 0x2ca   : > { %2467 = vst.msk [vmem:[%s3927_s23 + $0x10] sm:$0xff] %vm281_vm0, %v2443_v19  ;;  %v2446_v44 = vmul.f32 %v2950_v51, %v2314_v58 }
 0x2cb   : > { %2476 = vst.msk [vmem:[%s3927_s23 + $0x58] sm:$0xff] %vm281_vm0, %v2452_v2  ;;  %v2952_v48 = vpop.eup %2951 }
 0x2cc   : > { %2470 = vst.msk [vmem:[%s3927_s23 + $0x28] sm:$0xff] %vm281_vm0, %v2446_v44  ;;  %v2954_v57 = vpop.eup %2953  ;;  %v2447_v38 = vmul.f32 %v2952_v48, %v2315_v4 }
 0x2cd   : > { %v2956_v18 = vpop.eup %2955  ;;  %v2448_v13 = vmul.f32 %v2954_v57, %v2316_v46 }
 0x2ce   : > { %2471 = vst [vmem:[%s3927_s23 + $0x30] sm:$0xff] %v2447_v38  ;;  %v2450_v16 = vmul.f32 %v2956_v18, %v2318_v32 }
 0x2cf   : > { %2472 = vst [vmem:[%s3927_s23 + $0x38] sm:$0xff] %v2448_v13 }
 0x2d0   : > { %2474 = vst [vmem:[%s3927_s23 + $0x48] sm:$0xff] %v2450_v16 }
 0x2d1   : > { %v2958_v28 = vpop.eup %2957 }
 0x2d2   : > { %v2451_v25 = vmul.f32 %v2958_v28, %v2319_v26 }
 0x2d4   : > { %2475 = vst [vmem:[%s3927_s23 + $0x50] sm:$0xff] %v2451_v25 }
 0x2d5 PF: > { %s16_s18 = sadd.s32 1, %s2965_s18  }
 0x2d6   : > { %p13_p4 = scmp.ge.s32.totalorder %s16_s18, 4  }
 0x2d8   :  { %15 = sbr.rel (!%p13_p4) target bundleno = 1 (0x1), region = 85 }

</bundles_post_ra>
